<compile_context>
chip_gen: v7x
topology: tpu7x:2x2x1
jax: 0.10.0
libtpu: 0.0.40
codegen_flags: <defaults>
</compile_context>

<pallas_src>
import functools

import jax
import jax.numpy as jnp
import numpy as np
from jax.experimental import pallas as pl
from jax.experimental.pallas import tpu as pltpu


def lstm_last_linear_kernel(x_ref, wih_ref, whh_ref, b_ref, wout_ref, bout_ref,
                            out_ref, xp_sc, *, seq_len, batch, hidden):
    H = hidden

    # ---- Hoisted input projection: one MXU matmul covering all timesteps ----
    # x_ref is (T*B, I) time-major; wih_ref is (I, 4*H) with gate columns
    # ordered [i, f, o, g].  The sigmoid-gate (i/f/o) columns of the weights
    # and bias were pre-scaled by 0.5 so sigmoid(z) == 0.5*tanh(gates) + 0.5.
    xp_sc[...] = (jnp.dot(x_ref[...], wih_ref[...],
                          preferred_element_type=jnp.float32)
                  + b_ref[...])

    h0 = jnp.zeros((batch, H), jnp.float32)
    c0 = jnp.zeros((batch, H), jnp.float32)

    def step(t, carry):
        h, c = carry
        row = pl.multiple_of(t * batch, batch)
        xp_t = xp_sc[pl.ds(row, batch), :]                       # (B, 4H)
        gates = xp_t + jnp.dot(h, whh_ref[...],
                               preferred_element_type=jnp.float32)
        # One tanh over the full 4H-lane slab keeps all transcendental work on
        # the EUP; sigmoid gates are recovered with a cheap VPU fma.
        t_all = jnp.tanh(gates)                                  # (B, 4H)
        sig = 0.5 * t_all[:, :3 * H] + 0.5                       # i, f, o
        i_g = sig[:, 0 * H:1 * H]
        f_g = sig[:, 1 * H:2 * H]
        o_g = sig[:, 2 * H:3 * H]
        g_g = t_all[:, 3 * H:4 * H]
        c_new = f_g * c + i_g * g_g
        h_new = o_g * jnp.tanh(c_new)
        return (h_new, c_new)

    # Fully unrolled: gives the LLO scheduler cross-step visibility to overlap
    # the next step's xp_t load / vmatmul push with the current EUP tail.
    h_last, _ = jax.lax.fori_loop(0, seq_len, step, (h0, c0), unroll=True)

    # ---- Fused final Linear on the last hidden state (lane-dense output) ----
    out_ref[...] = (jnp.dot(h_last, wout_ref[...],
                            preferred_element_type=jnp.float32)
                    + bout_ref[...]).astype(out_ref.dtype)


def _prep_gate_weight(w):
    """w: (4H, K), rows in torch order [i, f, g, o] -> (K, 4H), columns ordered
    [i, f, o, g]; the sigmoid gates (i, f, o) are pre-scaled by 0.5 so the
    kernel can compute sigmoid(z) = 0.5*tanh(0.5*z) + 0.5 with a single tanh."""
    w_i, w_f, w_g, w_o = jnp.split(w, 4, axis=0)                 # each (H, K)
    blocks = [0.5 * w_i.T, 0.5 * w_f.T, 0.5 * w_o.T, w_g.T]      # each (K, H)
    return jnp.concatenate(blocks, axis=1)                       # (K, 4H)


def _prep_gate_bias(b):
    """b: (4H,) in torch order [i, f, g, o] -> (1, 4H) ordered [i, f, o, g],
    sigmoid-gate entries pre-scaled by 0.5."""
    b_i, b_f, b_g, b_o = jnp.split(b, 4)
    out = jnp.concatenate([0.5 * b_i, 0.5 * b_f, 0.5 * b_o, b_g])
    return out.reshape(1, -1)


def lstm_forward(x, w_ih, w_hh, b_ih, b_hh, w_out, b_out):
    """x: (B, T, I) float32.  Returns (B, out_dim) float32."""
    B, T, I = x.shape
    four_h = w_ih.shape[0]
    H = four_h // 4
    O = w_out.shape[0]
    OP = 128                                   # lane-dense output width

    assert (4 * H) % 128 == 0, "gate slab (4*H) must be lane-aligned"
    assert O <= OP, "output dim must fit the lane-dense output slab"

    # Pad batch to a multiple of 8 so every per-step xp slice is sublane
    # aligned; padded rows are batch-independent and sliced off at the end.
    BP = ((B + 7) // 8) * 8
    if BP != B:
        x = jnp.pad(x, ((0, BP - B), (0, 0), (0, 0)))

    # Time-major + flattened so timestep t occupies rows [t*BP, (t+1)*BP).
    x_tm = jnp.swapaxes(x, 0, 1).reshape(T * BP, I)

    # Weight plumbing (plain JAX glue, done once outside the kernel).
    w_ih_p = _prep_gate_weight(w_ih)                             # (I, 4H)
    w_hh_p = _prep_gate_weight(w_hh)                             # (H, 4H), no K padding
    bias_p = _prep_gate_bias(b_ih + b_hh)                        # (1, 4H)
    w_out_p = jnp.pad(jnp.transpose(w_out), ((0, 0), (0, OP - O)))  # (H, OP)
    b_out_p = jnp.pad(b_out, (0, OP - O)).reshape(1, OP)         # (1, OP)

    kernel = functools.partial(lstm_last_linear_kernel,
                               seq_len=T, batch=BP, hidden=H)

    flops = (2 * T * BP * I * 4 * H            # hoisted input projection
             + T * 2 * BP * H * 4 * H          # recurrent matmuls
             + 2 * BP * H * OP)                # final linear
    transcendentals = T * BP * (4 * H + H)     # tanh(gates) + tanh(c) per step
    bytes_accessed = 4 * (T * BP * I + I * 4 * H + H * 4 * H + 4 * H
                          + H * OP + OP + BP * OP)

    vmem_specs = [pl.BlockSpec(memory_space=pltpu.MemorySpace.VMEM)
                  for _ in range(6)]
    out_padded = pl.pallas_call(
        kernel,
        out_shape=jax.ShapeDtypeStruct((BP, OP), jnp.float32),
        in_specs=vmem_specs,
        out_specs=pl.BlockSpec(memory_space=pltpu.MemorySpace.VMEM),
        scratch_shapes=[pltpu.VMEM((T * BP, 4 * H), jnp.float32)],  # xp (128 KB)
        cost_estimate=pl.CostEstimate(flops=flops,
                                      transcendentals=transcendentals,
                                      bytes_accessed=bytes_accessed),
    )(x_tm, w_ih_p, w_hh_p, bias_p, w_out_p, b_out_p)

    return out_padded[:B, :O]


def lstm_reference(x, w_ih, w_hh, b_ih, b_hh, w_out, b_out):
    """Pure-JAX reference mirroring torch.nn.LSTM + Linear."""
    B, T, I = x.shape
    H = w_hh.shape[1]

    def step(carry, x_t):
        h, c = carry
        gates = x_t @ w_ih.T + b_ih + h @ w_hh.T + b_hh
        i_g = jax.nn.sigmoid(gates[:, 0 * H:1 * H])
        f_g = jax.nn.sigmoid(gates[:, 1 * H:2 * H])
        g_g = jnp.tanh(gates[:, 2 * H:3 * H])
        o_g = jax.nn.sigmoid(gates[:, 3 * H:4 * H])
        c = f_g * c + i_g * g_g
        h = o_g * jnp.tanh(c)
        return (h, c), h

    h0 = jnp.zeros((B, H), jnp.float32)
    c0 = jnp.zeros((B, H), jnp.float32)
    (h_last, _), _ = jax.lax.scan(step, (h0, c0), jnp.swapaxes(x, 0, 1))
    return h_last @ w_out.T + b_out


if __name__ == "__main__":
    # Module dims from __init__: input_dim=12, hidden_dim=64, out_dim=5.
    # Small test shapes (spec uses B=32, T=100; recurrence logic is identical).
    B, T, I, H, O = 8, 16, 12, 64, 5

    key = jax.random.PRNGKey(0)
    ks = jax.random.split(key, 7)
    scale = 1.0 / np.sqrt(H)
    x = jax.random.normal(ks[0], (B, T, I), dtype=jnp.float32)
    w_ih = jax.random.uniform(ks[1], (4 * H, I), jnp.float32, -scale, scale)
    w_hh = jax.random.uniform(ks[2], (4 * H, H), jnp.float32, -scale, scale)
    b_ih = jax.random.uniform(ks[3], (4 * H,), jnp.float32, -scale, scale)
    b_hh = jax.random.uniform(ks[4], (4 * H,), jnp.float32, -scale, scale)
    w_out = jax.random.uniform(ks[5], (O, H), jnp.float32, -scale, scale)
    b_out = jax.random.uniform(ks[6], (O,), jnp.float32, -scale, scale)

    out = lstm_forward(x, w_ih, w_hh, b_ih, b_hh, w_out, b_out)
    out = jax.block_until_ready(out)

    ref = lstm_reference(x, w_ih, w_hh, b_ih, b_hh, w_out, b_out)
    np.testing.assert_allclose(np.asarray(out), np.asarray(ref),
                               rtol=2e-3, atol=2e-3)
    assert out.shape == (B, O)

    # NOTE: the PyTorch forward's `print(out.shape4)` is a bug (AttributeError)
    # and is intentionally not reproduced.
    print("KERNEL_OK")
</pallas_src>

<mosaic_0001>
module attributes {stable_mosaic.version = 11 : i64} {
  func.func @lstm_last_linear_kernel(%arg0: memref<128x12xf32, #tpu.memory_space<vmem>>, %arg1: memref<12x256xf32, #tpu.memory_space<vmem>>, %arg2: memref<64x256xf32, #tpu.memory_space<vmem>>, %arg3: memref<1x256xf32, #tpu.memory_space<vmem>>, %arg4: memref<64x128xf32, #tpu.memory_space<vmem>>, %arg5: memref<1x128xf32, #tpu.memory_space<vmem>>, %arg6: memref<8x128xf32, #tpu.memory_space<vmem>>, %arg7: memref<128x256xf32, #tpu.memory_space<vmem>>) attributes {dimension_semantics = [], scalar_prefetch = 0 : i64, scratch_operands = 1 : i64, tpu.core_type = #tpu.core_type<tc>} {
    %c0 = arith.constant 0 : index
    %c0_0 = arith.constant 0 : index
    %0 = vector.load %arg0[%c0, %c0_0] : memref<128x12xf32, #tpu.memory_space<vmem>>, vector<128x12xf32>
    %c0_1 = arith.constant 0 : index
    %c0_2 = arith.constant 0 : index
    %1 = vector.load %arg1[%c0_1, %c0_2] : memref<12x256xf32, #tpu.memory_space<vmem>>, vector<12x256xf32>
    %cst = arith.constant dense<0.000000e+00> : vector<128x256xf32>
    %2 = tpu.matmul %0, %1, %cst {dimension_numbers = #tpu.dot_dimension_numbers<[1], [0], [0], [1], [0, 0, 1, 1], [], []>} : vector<128x12xf32>, vector<12x256xf32>, vector<128x256xf32> -> vector<128x256xf32>
    %c0_3 = arith.constant 0 : index
    %c0_4 = arith.constant 0 : index
    %3 = vector.load %arg3[%c0_3, %c0_4] : memref<1x256xf32, #tpu.memory_space<vmem>>, vector<1x256xf32>
    %4 = vector.broadcast %3 : vector<1x256xf32> to vector<128x256xf32>
    %5 = arith.addf %2, %4 : vector<128x256xf32>
    %c0_5 = arith.constant 0 : index
    %c0_6 = arith.constant 0 : index
    %6 = vector.load %arg7[%c0_5, %c0_6] : memref<128x256xf32, #tpu.memory_space<vmem>>, vector<128x256xf32>
    tpu.vector_store %arg7[%c0_5, %c0_6], %5 {strides = array<i32>} : memref<128x256xf32, #tpu.memory_space<vmem>>, vector<128x256xf32>,
    %cst_7 = arith.constant 0.000000e+00 : f32
    %7 = vector.broadcast %cst_7 : f32 to vector<8x64xf32>
    %cst_8 = arith.constant 0.000000e+00 : f32
    %8 = vector.broadcast %cst_8 : f32 to vector<8x64xf32>
    %c0_i32 = arith.constant 0 : i32
    %c8_i32 = arith.constant 8 : i32
    %9 = arith.muli %c0_i32, %c8_i32 : i32
    %10 = tpu.assume_multiple %9, 8 : i32
    %11 = arith.index_cast %10 : i32 to index
    %c0_9 = arith.constant 0 : index
    %12 = vector.load %arg7[%11, %c0_9] : memref<128x256xf32, #tpu.memory_space<vmem>>, vector<8x256xf32>
    %c0_10 = arith.constant 0 : index
    %c0_11 = arith.constant 0 : index
    %13 = vector.load %arg2[%c0_10, %c0_11] : memref<64x256xf32, #tpu.memory_space<vmem>>, vector<64x256xf32>
    %cst_12 = arith.constant dense<0.000000e+00> : vector<8x256xf32>
    %14 = tpu.matmul %7, %13, %cst_12 {dimension_numbers = #tpu.dot_dimension_numbers<[1], [0], [0], [1], [0, 0, 1, 1], [], []>} : vector<8x64xf32>, vector<64x256xf32>, vector<8x256xf32> -> vector<8x256xf32>
    %15 = arith.addf %12, %14 : vector<8x256xf32>
    %16 = math.tanh %15 : vector<8x256xf32>
    %17 = vector.extract_strided_slice %16 {offsets = [0, 0], sizes = [8, 192], strides = [1, 1]} : vector<8x256xf32> to vector<8x192xf32>
    %cst_13 = arith.constant 5.000000e-01 : f32
    %18 = vector.broadcast %cst_13 : f32 to vector<8x192xf32>
    %19 = arith.mulf %18, %17 : vector<8x192xf32>
    %cst_14 = arith.constant 5.000000e-01 : f32
    %20 = vector.broadcast %cst_14 : f32 to vector<8x192xf32>
    %21 = arith.addf %19, %20 : vector<8x192xf32>
    %22 = vector.extract_strided_slice %21 {offsets = [0, 0], sizes = [8, 64], strides = [1, 1]} : vector<8x192xf32> to vector<8x64xf32>
    %23 = vector.extract_strided_slice %21 {offsets = [0, 64], sizes = [8, 64], strides = [1, 1]} : vector<8x192xf32> to vector<8x64xf32>
    %24 = vector.extract_strided_slice %21 {offsets = [0, 128], sizes = [8, 64], strides = [1, 1]} : vector<8x192xf32> to vector<8x64xf32>
    %25 = vector.extract_strided_slice %16 {offsets = [0, 192], sizes = [8, 64], strides = [1, 1]} : vector<8x256xf32> to vector<8x64xf32>
    %26 = arith.mulf %23, %8 : vector<8x64xf32>
    %27 = arith.mulf %22, %25 : vector<8x64xf32>
    %28 = arith.addf %26, %27 : vector<8x64xf32>
    %29 = math.tanh %28 : vector<8x64xf32>
    %30 = arith.mulf %24, %29 : vector<8x64xf32>
    %c1_i32 = arith.constant 1 : i32
    %c8_i32_15 = arith.constant 8 : i32
    %31 = arith.muli %c1_i32, %c8_i32_15 : i32
    %32 = tpu.assume_multiple %31, 8 : i32
    %33 = arith.index_cast %32 : i32 to index
    %c0_16 = arith.constant 0 : index
    %34 = vector.load %arg7[%33, %c0_16] : memref<128x256xf32, #tpu.memory_space<vmem>>, vector<8x256xf32>
    %c0_17 = arith.constant 0 : index
    %c0_18 = arith.constant 0 : index
    %35 = vector.load %arg2[%c0_17, %c0_18] : memref<64x256xf32, #tpu.memory_space<vmem>>, vector<64x256xf32>
    %cst_19 = arith.constant dense<0.000000e+00> : vector<8x256xf32>
    %36 = tpu.matmul %30, %35, %cst_19 {dimension_numbers = #tpu.dot_dimension_numbers<[1], [0], [0], [1], [0, 0, 1, 1], [], []>} : vector<8x64xf32>, vector<64x256xf32>, vector<8x256xf32> -> vector<8x256xf32>
    %37 = arith.addf %34, %36 : vector<8x256xf32>
    %38 = math.tanh %37 : vector<8x256xf32>
    %39 = vector.extract_strided_slice %38 {offsets = [0, 0], sizes = [8, 192], strides = [1, 1]} : vector<8x256xf32> to vector<8x192xf32>
    %cst_20 = arith.constant 5.000000e-01 : f32
    %40 = vector.broadcast %cst_20 : f32 to vector<8x192xf32>
    %41 = arith.mulf %40, %39 : vector<8x192xf32>
    %cst_21 = arith.constant 5.000000e-01 : f32
    %42 = vector.broadcast %cst_21 : f32 to vector<8x192xf32>
    %43 = arith.addf %41, %42 : vector<8x192xf32>
    %44 = vector.extract_strided_slice %43 {offsets = [0, 0], sizes = [8, 64], strides = [1, 1]} : vector<8x192xf32> to vector<8x64xf32>
    %45 = vector.extract_strided_slice %43 {offsets = [0, 64], sizes = [8, 64], strides = [1, 1]} : vector<8x192xf32> to vector<8x64xf32>
    %46 = vector.extract_strided_slice %43 {offsets = [0, 128], sizes = [8, 64], strides = [1, 1]} : vector<8x192xf32> to vector<8x64xf32>
    %47 = vector.extract_strided_slice %38 {offsets = [0, 192], sizes = [8, 64], strides = [1, 1]} : vector<8x256xf32> to vector<8x64xf32>
    %48 = arith.mulf %45, %28 : vector<8x64xf32>
    %49 = arith.mulf %44, %47 : vector<8x64xf32>
    %50 = arith.addf %48, %49 : vector<8x64xf32>
    %51 = math.tanh %50 : vector<8x64xf32>
    %52 = arith.mulf %46, %51 : vector<8x64xf32>
    %c2_i32 = arith.constant 2 : i32
    %c8_i32_22 = arith.constant 8 : i32
    %53 = arith.muli %c2_i32, %c8_i32_22 : i32
    %54 = tpu.assume_multiple %53, 8 : i32
    %55 = arith.index_cast %54 : i32 to index
    %c0_23 = arith.constant 0 : index
    %56 = vector.load %arg7[%55, %c0_23] : memref<128x256xf32, #tpu.memory_space<vmem>>, vector<8x256xf32>
    %c0_24 = arith.constant 0 : index
    %c0_25 = arith.constant 0 : index
    %57 = vector.load %arg2[%c0_24, %c0_25] : memref<64x256xf32, #tpu.memory_space<vmem>>, vector<64x256xf32>
    %cst_26 = arith.constant dense<0.000000e+00> : vector<8x256xf32>
    %58 = tpu.matmul %52, %57, %cst_26 {dimension_numbers = #tpu.dot_dimension_numbers<[1], [0], [0], [1], [0, 0, 1, 1], [], []>} : vector<8x64xf32>, vector<64x256xf32>, vector<8x256xf32> -> vector<8x256xf32>
    %59 = arith.addf %56, %58 : vector<8x256xf32>
    %60 = math.tanh %59 : vector<8x256xf32>
    %61 = vector.extract_strided_slice %60 {offsets = [0, 0], sizes = [8, 192], strides = [1, 1]} : vector<8x256xf32> to vector<8x192xf32>
    %cst_27 = arith.constant 5.000000e-01 : f32
    %62 = vector.broadcast %cst_27 : f32 to vector<8x192xf32>
    %63 = arith.mulf %62, %61 : vector<8x192xf32>
    %cst_28 = arith.constant 5.000000e-01 : f32
    %64 = vector.broadcast %cst_28 : f32 to vector<8x192xf32>
    %65 = arith.addf %63, %64 : vector<8x192xf32>
    %66 = vector.extract_strided_slice %65 {offsets = [0, 0], sizes = [8, 64], strides = [1, 1]} : vector<8x192xf32> to vector<8x64xf32>
    %67 = vector.extract_strided_slice %65 {offsets = [0, 64], sizes = [8, 64], strides = [1, 1]} : vector<8x192xf32> to vector<8x64xf32>
    %68 = vector.extract_strided_slice %65 {offsets = [0, 128], sizes = [8, 64], strides = [1, 1]} : vector<8x192xf32> to vector<8x64xf32>
    %69 = vector.extract_strided_slice %60 {offsets = [0, 192], sizes = [8, 64], strides = [1, 1]} : vector<8x256xf32> to vector<8x64xf32>
    %70 = arith.mulf %67, %50 : vector<8x64xf32>
    %71 = arith.mulf %66, %69 : vector<8x64xf32>
    %72 = arith.addf %70, %71 : vector<8x64xf32>
    %73 = math.tanh %72 : vector<8x64xf32>
    %74 = arith.mulf %68, %73 : vector<8x64xf32>
    %c3_i32 = arith.constant 3 : i32
    %c8_i32_29 = arith.constant 8 : i32
    %75 = arith.muli %c3_i32, %c8_i32_29 : i32
    %76 = tpu.assume_multiple %75, 8 : i32
    %77 = arith.index_cast %76 : i32 to index
    %c0_30 = arith.constant 0 : index
    %78 = vector.load %arg7[%77, %c0_30] : memref<128x256xf32, #tpu.memory_space<vmem>>, vector<8x256xf32>
    %c0_31 = arith.constant 0 : index
    %c0_32 = arith.constant 0 : index
    %79 = vector.load %arg2[%c0_31, %c0_32] : memref<64x256xf32, #tpu.memory_space<vmem>>, vector<64x256xf32>
    %cst_33 = arith.constant dense<0.000000e+00> : vector<8x256xf32>
    %80 = tpu.matmul %74, %79, %cst_33 {dimension_numbers = #tpu.dot_dimension_numbers<[1], [0], [0], [1], [0, 0, 1, 1], [], []>} : vector<8x64xf32>, vector<64x256xf32>, vector<8x256xf32> -> vector<8x256xf32>
    %81 = arith.addf %78, %80 : vector<8x256xf32>
    %82 = math.tanh %81 : vector<8x256xf32>
    %83 = vector.extract_strided_slice %82 {offsets = [0, 0], sizes = [8, 192], strides = [1, 1]} : vector<8x256xf32> to vector<8x192xf32>
    %cst_34 = arith.constant 5.000000e-01 : f32
    %84 = vector.broadcast %cst_34 : f32 to vector<8x192xf32>
    %85 = arith.mulf %84, %83 : vector<8x192xf32>
    %cst_35 = arith.constant 5.000000e-01 : f32
    %86 = vector.broadcast %cst_35 : f32 to vector<8x192xf32>
    %87 = arith.addf %85, %86 : vector<8x192xf32>
    %88 = vector.extract_strided_slice %87 {offsets = [0, 0], sizes = [8, 64], strides = [1, 1]} : vector<8x192xf32> to vector<8x64xf32>
    %89 = vector.extract_strided_slice %87 {offsets = [0, 64], sizes = [8, 64], strides = [1, 1]} : vector<8x192xf32> to vector<8x64xf32>
    %90 = vector.extract_strided_slice %87 {offsets = [0, 128], sizes = [8, 64], strides = [1, 1]} : vector<8x192xf32> to vector<8x64xf32>
    %91 = vector.extract_strided_slice %82 {offsets = [0, 192], sizes = [8, 64], strides = [1, 1]} : vector<8x256xf32> to vector<8x64xf32>
    %92 = arith.mulf %89, %72 : vector<8x64xf32>
    %93 = arith.mulf %88, %91 : vector<8x64xf32>
    %94 = arith.addf %92, %93 : vector<8x64xf32>
    %95 = math.tanh %94 : vector<8x64xf32>
    %96 = arith.mulf %90, %95 : vector<8x64xf32>
    %c4_i32 = arith.constant 4 : i32
    %c8_i32_36 = arith.constant 8 : i32
    %97 = arith.muli %c4_i32, %c8_i32_36 : i32
    %98 = tpu.assume_multiple %97, 8 : i32
    %99 = arith.index_cast %98 : i32 to index
    %c0_37 = arith.constant 0 : index
    %100 = vector.load %arg7[%99, %c0_37] : memref<128x256xf32, #tpu.memory_space<vmem>>, vector<8x256xf32>
    %c0_38 = arith.constant 0 : index
    %c0_39 = arith.constant 0 : index
    %101 = vector.load %arg2[%c0_38, %c0_39] : memref<64x256xf32, #tpu.memory_space<vmem>>, vector<64x256xf32>
    %cst_40 = arith.constant dense<0.000000e+00> : vector<8x256xf32>
    %102 = tpu.matmul %96, %101, %cst_40 {dimension_numbers = #tpu.dot_dimension_numbers<[1], [0], [0], [1], [0, 0, 1, 1], [], []>} : vector<8x64xf32>, vector<64x256xf32>, vector<8x256xf32> -> vector<8x256xf32>
    %103 = arith.addf %100, %102 : vector<8x256xf32>
    %104 = math.tanh %103 : vector<8x256xf32>
    %105 = vector.extract_strided_slice %104 {offsets = [0, 0], sizes = [8, 192], strides = [1, 1]} : vector<8x256xf32> to vector<8x192xf32>
    %cst_41 = arith.constant 5.000000e-01 : f32
    %106 = vector.broadcast %cst_41 : f32 to vector<8x192xf32>
    %107 = arith.mulf %106, %105 : vector<8x192xf32>
    %cst_42 = arith.constant 5.000000e-01 : f32
    %108 = vector.broadcast %cst_42 : f32 to vector<8x192xf32>
    %109 = arith.addf %107, %108 : vector<8x192xf32>
    %110 = vector.extract_strided_slice %109 {offsets = [0, 0], sizes = [8, 64], strides = [1, 1]} : vector<8x192xf32> to vector<8x64xf32>
    %111 = vector.extract_strided_slice %109 {offsets = [0, 64], sizes = [8, 64], strides = [1, 1]} : vector<8x192xf32> to vector<8x64xf32>
    %112 = vector.extract_strided_slice %109 {offsets = [0, 128], sizes = [8, 64], strides = [1, 1]} : vector<8x192xf32> to vector<8x64xf32>
    %113 = vector.extract_strided_slice %104 {offsets = [0, 192], sizes = [8, 64], strides = [1, 1]} : vector<8x256xf32> to vector<8x64xf32>
    %114 = arith.mulf %111, %94 : vector<8x64xf32>
    %115 = arith.mulf %110, %113 : vector<8x64xf32>
    %116 = arith.addf %114, %115 : vector<8x64xf32>
    %117 = math.tanh %116 : vector<8x64xf32>
    %118 = arith.mulf %112, %117 : vector<8x64xf32>
    %c5_i32 = arith.constant 5 : i32
    %c8_i32_43 = arith.constant 8 : i32
    %119 = arith.muli %c5_i32, %c8_i32_43 : i32
    %120 = tpu.assume_multiple %119, 8 : i32
    %121 = arith.index_cast %120 : i32 to index
    %c0_44 = arith.constant 0 : index
    %122 = vector.load %arg7[%121, %c0_44] : memref<128x256xf32, #tpu.memory_space<vmem>>, vector<8x256xf32>
    %c0_45 = arith.constant 0 : index
    %c0_46 = arith.constant 0 : index
    %123 = vector.load %arg2[%c0_45, %c0_46] : memref<64x256xf32, #tpu.memory_space<vmem>>, vector<64x256xf32>
    %cst_47 = arith.constant dense<0.000000e+00> : vector<8x256xf32>
    %124 = tpu.matmul %118, %123, %cst_47 {dimension_numbers = #tpu.dot_dimension_numbers<[1], [0], [0], [1], [0, 0, 1, 1], [], []>} : vector<8x64xf32>, vector<64x256xf32>, vector<8x256xf32> -> vector<8x256xf32>
    %125 = arith.addf %122, %124 : vector<8x256xf32>
    %126 = math.tanh %125 : vector<8x256xf32>
    %127 = vector.extract_strided_slice %126 {offsets = [0, 0], sizes = [8, 192], strides = [1, 1]} : vector<8x256xf32> to vector<8x192xf32>
    %cst_48 = arith.constant 5.000000e-01 : f32
    %128 = vector.broadcast %cst_48 : f32 to vector<8x192xf32>
    %129 = arith.mulf %128, %127 : vector<8x192xf32>
    %cst_49 = arith.constant 5.000000e-01 : f32
    %130 = vector.broadcast %cst_49 : f32 to vector<8x192xf32>
    %131 = arith.addf %129, %130 : vector<8x192xf32>
    %132 = vector.extract_strided_slice %131 {offsets = [0, 0], sizes = [8, 64], strides = [1, 1]} : vector<8x192xf32> to vector<8x64xf32>
    %133 = vector.extract_strided_slice %131 {offsets = [0, 64], sizes = [8, 64], strides = [1, 1]} : vector<8x192xf32> to vector<8x64xf32>
    %134 = vector.extract_strided_slice %131 {offsets = [0, 128], sizes = [8, 64], strides = [1, 1]} : vector<8x192xf32> to vector<8x64xf32>
    %135 = vector.extract_strided_slice %126 {offsets = [0, 192], sizes = [8, 64], strides = [1, 1]} : vector<8x256xf32> to vector<8x64xf32>
    %136 = arith.mulf %133, %116 : vector<8x64xf32>
    %137 = arith.mulf %132, %135 : vector<8x64xf32>
    %138 = arith.addf %136, %137 : vector<8x64xf32>
    %139 = math.tanh %138 : vector<8x64xf32>
    %140 = arith.mulf %134, %139 : vector<8x64xf32>
    %c6_i32 = arith.constant 6 : i32
    %c8_i32_50 = arith.constant 8 : i32
    %141 = arith.muli %c6_i32, %c8_i32_50 : i32
    %142 = tpu.assume_multiple %141, 8 : i32
    %143 = arith.index_cast %142 : i32 to index
    %c0_51 = arith.constant 0 : index
    %144 = vector.load %arg7[%143, %c0_51] : memref<128x256xf32, #tpu.memory_space<vmem>>, vector<8x256xf32>
    %c0_52 = arith.constant 0 : index
    %c0_53 = arith.constant 0 : index
    %145 = vector.load %arg2[%c0_52, %c0_53] : memref<64x256xf32, #tpu.memory_space<vmem>>, vector<64x256xf32>
    %cst_54 = arith.constant dense<0.000000e+00> : vector<8x256xf32>
    %146 = tpu.matmul %140, %145, %cst_54 {dimension_numbers = #tpu.dot_dimension_numbers<[1], [0], [0], [1], [0, 0, 1, 1], [], []>} : vector<8x64xf32>, vector<64x256xf32>, vector<8x256xf32> -> vector<8x256xf32>
    %147 = arith.addf %144, %146 : vector<8x256xf32>
    %148 = math.tanh %147 : vector<8x256xf32>
    %149 = vector.extract_strided_slice %148 {offsets = [0, 0], sizes = [8, 192], strides = [1, 1]} : vector<8x256xf32> to vector<8x192xf32>
    %cst_55 = arith.constant 5.000000e-01 : f32
    %150 = vector.broadcast %cst_55 : f32 to vector<8x192xf32>
    %151 = arith.mulf %150, %149 : vector<8x192xf32>
    %cst_56 = arith.constant 5.000000e-01 : f32
    %152 = vector.broadcast %cst_56 : f32 to vector<8x192xf32>
    %153 = arith.addf %151, %152 : vector<8x192xf32>
    %154 = vector.extract_strided_slice %153 {offsets = [0, 0], sizes = [8, 64], strides = [1, 1]} : vector<8x192xf32> to vector<8x64xf32>
    %155 = vector.extract_strided_slice %153 {offsets = [0, 64], sizes = [8, 64], strides = [1, 1]} : vector<8x192xf32> to vector<8x64xf32>
    %156 = vector.extract_strided_slice %153 {offsets = [0, 128], sizes = [8, 64], strides = [1, 1]} : vector<8x192xf32> to vector<8x64xf32>
    %157 = vector.extract_strided_slice %148 {offsets = [0, 192], sizes = [8, 64], strides = [1, 1]} : vector<8x256xf32> to vector<8x64xf32>
    %158 = arith.mulf %155, %138 : vector<8x64xf32>
    %159 = arith.mulf %154, %157 : vector<8x64xf32>
    %160 = arith.addf %158, %159 : vector<8x64xf32>
    %161 = math.tanh %160 : vector<8x64xf32>
    %162 = arith.mulf %156, %161 : vector<8x64xf32>
    %c7_i32 = arith.constant 7 : i32
    %c8_i32_57 = arith.constant 8 : i32
    %163 = arith.muli %c7_i32, %c8_i32_57 : i32
    %164 = tpu.assume_multiple %163, 8 : i32
    %165 = arith.index_cast %164 : i32 to index
    %c0_58 = arith.constant 0 : index
    %166 = vector.load %arg7[%165, %c0_58] : memref<128x256xf32, #tpu.memory_space<vmem>>, vector<8x256xf32>
    %c0_59 = arith.constant 0 : index
    %c0_60 = arith.constant 0 : index
    %167 = vector.load %arg2[%c0_59, %c0_60] : memref<64x256xf32, #tpu.memory_space<vmem>>, vector<64x256xf32>
    %cst_61 = arith.constant dense<0.000000e+00> : vector<8x256xf32>
    %168 = tpu.matmul %162, %167, %cst_61 {dimension_numbers = #tpu.dot_dimension_numbers<[1], [0], [0], [1], [0, 0, 1, 1], [], []>} : vector<8x64xf32>, vector<64x256xf32>, vector<8x256xf32> -> vector<8x256xf32>
    %169 = arith.addf %166, %168 : vector<8x256xf32>
    %170 = math.tanh %169 : vector<8x256xf32>
    %171 = vector.extract_strided_slice %170 {offsets = [0, 0], sizes = [8, 192], strides = [1, 1]} : vector<8x256xf32> to vector<8x192xf32>
    %cst_62 = arith.constant 5.000000e-01 : f32
    %172 = vector.broadcast %cst_62 : f32 to vector<8x192xf32>
    %173 = arith.mulf %172, %171 : vector<8x192xf32>
    %cst_63 = arith.constant 5.000000e-01 : f32
    %174 = vector.broadcast %cst_63 : f32 to vector<8x192xf32>
    %175 = arith.addf %173, %174 : vector<8x192xf32>
    %176 = vector.extract_strided_slice %175 {offsets = [0, 0], sizes = [8, 64], strides = [1, 1]} : vector<8x192xf32> to vector<8x64xf32>
    %177 = vector.extract_strided_slice %175 {offsets = [0, 64], sizes = [8, 64], strides = [1, 1]} : vector<8x192xf32> to vector<8x64xf32>
    %178 = vector.extract_strided_slice %175 {offsets = [0, 128], sizes = [8, 64], strides = [1, 1]} : vector<8x192xf32> to vector<8x64xf32>
    %179 = vector.extract_strided_slice %170 {offsets = [0, 192], sizes = [8, 64], strides = [1, 1]} : vector<8x256xf32> to vector<8x64xf32>
    %180 = arith.mulf %177, %160 : vector<8x64xf32>
    %181 = arith.mulf %176, %179 : vector<8x64xf32>
    %182 = arith.addf %180, %181 : vector<8x64xf32>
    %183 = math.tanh %182 : vector<8x64xf32>
    %184 = arith.mulf %178, %183 : vector<8x64xf32>
    %c8_i32_64 = arith.constant 8 : i32
    %c8_i32_65 = arith.constant 8 : i32
    %185 = arith.muli %c8_i32_64, %c8_i32_65 : i32
    %186 = tpu.assume_multiple %185, 8 : i32
    %187 = arith.index_cast %186 : i32 to index
    %c0_66 = arith.constant 0 : index
    %188 = vector.load %arg7[%187, %c0_66] : memref<128x256xf32, #tpu.memory_space<vmem>>, vector<8x256xf32>
    %c0_67 = arith.constant 0 : index
    %c0_68 = arith.constant 0 : index
    %189 = vector.load %arg2[%c0_67, %c0_68] : memref<64x256xf32, #tpu.memory_space<vmem>>, vector<64x256xf32>
    %cst_69 = arith.constant dense<0.000000e+00> : vector<8x256xf32>
    %190 = tpu.matmul %184, %189, %cst_69 {dimension_numbers = #tpu.dot_dimension_numbers<[1], [0], [0], [1], [0, 0, 1, 1], [], []>} : vector<8x64xf32>, vector<64x256xf32>, vector<8x256xf32> -> vector<8x256xf32>
    %191 = arith.addf %188, %190 : vector<8x256xf32>
    %192 = math.tanh %191 : vector<8x256xf32>
    %193 = vector.extract_strided_slice %192 {offsets = [0, 0], sizes = [8, 192], strides = [1, 1]} : vector<8x256xf32> to vector<8x192xf32>
    %cst_70 = arith.constant 5.000000e-01 : f32
    %194 = vector.broadcast %cst_70 : f32 to vector<8x192xf32>
    %195 = arith.mulf %194, %193 : vector<8x192xf32>
    %cst_71 = arith.constant 5.000000e-01 : f32
    %196 = vector.broadcast %cst_71 : f32 to vector<8x192xf32>
    %197 = arith.addf %195, %196 : vector<8x192xf32>
    %198 = vector.extract_strided_slice %197 {offsets = [0, 0], sizes = [8, 64], strides = [1, 1]} : vector<8x192xf32> to vector<8x64xf32>
    %199 = vector.extract_strided_slice %197 {offsets = [0, 64], sizes = [8, 64], strides = [1, 1]} : vector<8x192xf32> to vector<8x64xf32>
    %200 = vector.extract_strided_slice %197 {offsets = [0, 128], sizes = [8, 64], strides = [1, 1]} : vector<8x192xf32> to vector<8x64xf32>
    %201 = vector.extract_strided_slice %192 {offsets = [0, 192], sizes = [8, 64], strides = [1, 1]} : vector<8x256xf32> to vector<8x64xf32>
    %202 = arith.mulf %199, %182 : vector<8x64xf32>
    %203 = arith.mulf %198, %201 : vector<8x64xf32>
    %204 = arith.addf %202, %203 : vector<8x64xf32>
    %205 = math.tanh %204 : vector<8x64xf32>
    %206 = arith.mulf %200, %205 : vector<8x64xf32>
    %c9_i32 = arith.constant 9 : i32
    %c8_i32_72 = arith.constant 8 : i32
    %207 = arith.muli %c9_i32, %c8_i32_72 : i32
    %208 = tpu.assume_multiple %207, 8 : i32
    %209 = arith.index_cast %208 : i32 to index
    %c0_73 = arith.constant 0 : index
    %210 = vector.load %arg7[%209, %c0_73] : memref<128x256xf32, #tpu.memory_space<vmem>>, vector<8x256xf32>
    %c0_74 = arith.constant 0 : index
    %c0_75 = arith.constant 0 : index
    %211 = vector.load %arg2[%c0_74, %c0_75] : memref<64x256xf32, #tpu.memory_space<vmem>>, vector<64x256xf32>
    %cst_76 = arith.constant dense<0.000000e+00> : vector<8x256xf32>
    %212 = tpu.matmul %206, %211, %cst_76 {dimension_numbers = #tpu.dot_dimension_numbers<[1], [0], [0], [1], [0, 0, 1, 1], [], []>} : vector<8x64xf32>, vector<64x256xf32>, vector<8x256xf32> -> vector<8x256xf32>
    %213 = arith.addf %210, %212 : vector<8x256xf32>
    %214 = math.tanh %213 : vector<8x256xf32>
    %215 = vector.extract_strided_slice %214 {offsets = [0, 0], sizes = [8, 192], strides = [1, 1]} : vector<8x256xf32> to vector<8x192xf32>
    %cst_77 = arith.constant 5.000000e-01 : f32
    %216 = vector.broadcast %cst_77 : f32 to vector<8x192xf32>
    %217 = arith.mulf %216, %215 : vector<8x192xf32>
    %cst_78 = arith.constant 5.000000e-01 : f32
    %218 = vector.broadcast %cst_78 : f32 to vector<8x192xf32>
    %219 = arith.addf %217, %218 : vector<8x192xf32>
    %220 = vector.extract_strided_slice %219 {offsets = [0, 0], sizes = [8, 64], strides = [1, 1]} : vector<8x192xf32> to vector<8x64xf32>
    %221 = vector.extract_strided_slice %219 {offsets = [0, 64], sizes = [8, 64], strides = [1, 1]} : vector<8x192xf32> to vector<8x64xf32>
    %222 = vector.extract_strided_slice %219 {offsets = [0, 128], sizes = [8, 64], strides = [1, 1]} : vector<8x192xf32> to vector<8x64xf32>
    %223 = vector.extract_strided_slice %214 {offsets = [0, 192], sizes = [8, 64], strides = [1, 1]} : vector<8x256xf32> to vector<8x64xf32>
    %224 = arith.mulf %221, %204 : vector<8x64xf32>
    %225 = arith.mulf %220, %223 : vector<8x64xf32>
    %226 = arith.addf %224, %225 : vector<8x64xf32>
    %227 = math.tanh %226 : vector<8x64xf32>
    %228 = arith.mulf %222, %227 : vector<8x64xf32>
    %c10_i32 = arith.constant 10 : i32
    %c8_i32_79 = arith.constant 8 : i32
    %229 = arith.muli %c10_i32, %c8_i32_79 : i32
    %230 = tpu.assume_multiple %229, 8 : i32
    %231 = arith.index_cast %230 : i32 to index
    %c0_80 = arith.constant 0 : index
    %232 = vector.load %arg7[%231, %c0_80] : memref<128x256xf32, #tpu.memory_space<vmem>>, vector<8x256xf32>
    %c0_81 = arith.constant 0 : index
    %c0_82 = arith.constant 0 : index
    %233 = vector.load %arg2[%c0_81, %c0_82] : memref<64x256xf32, #tpu.memory_space<vmem>>, vector<64x256xf32>
    %cst_83 = arith.constant dense<0.000000e+00> : vector<8x256xf32>
    %234 = tpu.matmul %228, %233, %cst_83 {dimension_numbers = #tpu.dot_dimension_numbers<[1], [0], [0], [1], [0, 0, 1, 1], [], []>} : vector<8x64xf32>, vector<64x256xf32>, vector<8x256xf32> -> vector<8x256xf32>
    %235 = arith.addf %232, %234 : vector<8x256xf32>
    %236 = math.tanh %235 : vector<8x256xf32>
    %237 = vector.extract_strided_slice %236 {offsets = [0, 0], sizes = [8, 192], strides = [1, 1]} : vector<8x256xf32> to vector<8x192xf32>
    %cst_84 = arith.constant 5.000000e-01 : f32
    %238 = vector.broadcast %cst_84 : f32 to vector<8x192xf32>
    %239 = arith.mulf %238, %237 : vector<8x192xf32>
    %cst_85 = arith.constant 5.000000e-01 : f32
    %240 = vector.broadcast %cst_85 : f32 to vector<8x192xf32>
    %241 = arith.addf %239, %240 : vector<8x192xf32>
    %242 = vector.extract_strided_slice %241 {offsets = [0, 0], sizes = [8, 64], strides = [1, 1]} : vector<8x192xf32> to vector<8x64xf32>
    %243 = vector.extract_strided_slice %241 {offsets = [0, 64], sizes = [8, 64], strides = [1, 1]} : vector<8x192xf32> to vector<8x64xf32>
    %244 = vector.extract_strided_slice %241 {offsets = [0, 128], sizes = [8, 64], strides = [1, 1]} : vector<8x192xf32> to vector<8x64xf32>
    %245 = vector.extract_strided_slice %236 {offsets = [0, 192], sizes = [8, 64], strides = [1, 1]} : vector<8x256xf32> to vector<8x64xf32>
    %246 = arith.mulf %243, %226 : vector<8x64xf32>
    %247 = arith.mulf %242, %245 : vector<8x64xf32>
    %248 = arith.addf %246, %247 : vector<8x64xf32>
    %249 = math.tanh %248 : vector<8x64xf32>
    %250 = arith.mulf %244, %249 : vector<8x64xf32>
    %c11_i32 = arith.constant 11 : i32
    %c8_i32_86 = arith.constant 8 : i32
    %251 = arith.muli %c11_i32, %c8_i32_86 : i32
    %252 = tpu.assume_multiple %251, 8 : i32
    %253 = arith.index_cast %252 : i32 to index
    %c0_87 = arith.constant 0 : index
    %254 = vector.load %arg7[%253, %c0_87] : memref<128x256xf32, #tpu.memory_space<vmem>>, vector<8x256xf32>
    %c0_88 = arith.constant 0 : index
    %c0_89 = arith.constant 0 : index
    %255 = vector.load %arg2[%c0_88, %c0_89] : memref<64x256xf32, #tpu.memory_space<vmem>>, vector<64x256xf32>
    %cst_90 = arith.constant dense<0.000000e+00> : vector<8x256xf32>
    %256 = tpu.matmul %250, %255, %cst_90 {dimension_numbers = #tpu.dot_dimension_numbers<[1], [0], [0], [1], [0, 0, 1, 1], [], []>} : vector<8x64xf32>, vector<64x256xf32>, vector<8x256xf32> -> vector<8x256xf32>
    %257 = arith.addf %254, %256 : vector<8x256xf32>
    %258 = math.tanh %257 : vector<8x256xf32>
    %259 = vector.extract_strided_slice %258 {offsets = [0, 0], sizes = [8, 192], strides = [1, 1]} : vector<8x256xf32> to vector<8x192xf32>
    %cst_91 = arith.constant 5.000000e-01 : f32
    %260 = vector.broadcast %cst_91 : f32 to vector<8x192xf32>
    %261 = arith.mulf %260, %259 : vector<8x192xf32>
    %cst_92 = arith.constant 5.000000e-01 : f32
    %262 = vector.broadcast %cst_92 : f32 to vector<8x192xf32>
    %263 = arith.addf %261, %262 : vector<8x192xf32>
    %264 = vector.extract_strided_slice %263 {offsets = [0, 0], sizes = [8, 64], strides = [1, 1]} : vector<8x192xf32> to vector<8x64xf32>
    %265 = vector.extract_strided_slice %263 {offsets = [0, 64], sizes = [8, 64], strides = [1, 1]} : vector<8x192xf32> to vector<8x64xf32>
    %266 = vector.extract_strided_slice %263 {offsets = [0, 128], sizes = [8, 64], strides = [1, 1]} : vector<8x192xf32> to vector<8x64xf32>
    %267 = vector.extract_strided_slice %258 {offsets = [0, 192], sizes = [8, 64], strides = [1, 1]} : vector<8x256xf32> to vector<8x64xf32>
    %268 = arith.mulf %265, %248 : vector<8x64xf32>
    %269 = arith.mulf %264, %267 : vector<8x64xf32>
    %270 = arith.addf %268, %269 : vector<8x64xf32>
    %271 = math.tanh %270 : vector<8x64xf32>
    %272 = arith.mulf %266, %271 : vector<8x64xf32>
    %c12_i32 = arith.constant 12 : i32
    %c8_i32_93 = arith.constant 8 : i32
    %273 = arith.muli %c12_i32, %c8_i32_93 : i32
    %274 = tpu.assume_multiple %273, 8 : i32
    %275 = arith.index_cast %274 : i32 to index
    %c0_94 = arith.constant 0 : index
    %276 = vector.load %arg7[%275, %c0_94] : memref<128x256xf32, #tpu.memory_space<vmem>>, vector<8x256xf32>
    %c0_95 = arith.constant 0 : index
    %c0_96 = arith.constant 0 : index
    %277 = vector.load %arg2[%c0_95, %c0_96] : memref<64x256xf32, #tpu.memory_space<vmem>>, vector<64x256xf32>
    %cst_97 = arith.constant dense<0.000000e+00> : vector<8x256xf32>
    %278 = tpu.matmul %272, %277, %cst_97 {dimension_numbers = #tpu.dot_dimension_numbers<[1], [0], [0], [1], [0, 0, 1, 1], [], []>} : vector<8x64xf32>, vector<64x256xf32>, vector<8x256xf32> -> vector<8x256xf32>
    %279 = arith.addf %276, %278 : vector<8x256xf32>
    %280 = math.tanh %279 : vector<8x256xf32>
    %281 = vector.extract_strided_slice %280 {offsets = [0, 0], sizes = [8, 192], strides = [1, 1]} : vector<8x256xf32> to vector<8x192xf32>
    %cst_98 = arith.constant 5.000000e-01 : f32
    %282 = vector.broadcast %cst_98 : f32 to vector<8x192xf32>
    %283 = arith.mulf %282, %281 : vector<8x192xf32>
    %cst_99 = arith.constant 5.000000e-01 : f32
    %284 = vector.broadcast %cst_99 : f32 to vector<8x192xf32>
    %285 = arith.addf %283, %284 : vector<8x192xf32>
    %286 = vector.extract_strided_slice %285 {offsets = [0, 0], sizes = [8, 64], strides = [1, 1]} : vector<8x192xf32> to vector<8x64xf32>
    %287 = vector.extract_strided_slice %285 {offsets = [0, 64], sizes = [8, 64], strides = [1, 1]} : vector<8x192xf32> to vector<8x64xf32>
    %288 = vector.extract_strided_slice %285 {offsets = [0, 128], sizes = [8, 64], strides = [1, 1]} : vector<8x192xf32> to vector<8x64xf32>
    %289 = vector.extract_strided_slice %280 {offsets = [0, 192], sizes = [8, 64], strides = [1, 1]} : vector<8x256xf32> to vector<8x64xf32>
    %290 = arith.mulf %287, %270 : vector<8x64xf32>
    %291 = arith.mulf %286, %289 : vector<8x64xf32>
    %292 = arith.addf %290, %291 : vector<8x64xf32>
    %293 = math.tanh %292 : vector<8x64xf32>
    %294 = arith.mulf %288, %293 : vector<8x64xf32>
    %c13_i32 = arith.constant 13 : i32
    %c8_i32_100 = arith.constant 8 : i32
    %295 = arith.muli %c13_i32, %c8_i32_100 : i32
    %296 = tpu.assume_multiple %295, 8 : i32
    %297 = arith.index_cast %296 : i32 to index
    %c0_101 = arith.constant 0 : index
    %298 = vector.load %arg7[%297, %c0_101] : memref<128x256xf32, #tpu.memory_space<vmem>>, vector<8x256xf32>
    %c0_102 = arith.constant 0 : index
    %c0_103 = arith.constant 0 : index
    %299 = vector.load %arg2[%c0_102, %c0_103] : memref<64x256xf32, #tpu.memory_space<vmem>>, vector<64x256xf32>
    %cst_104 = arith.constant dense<0.000000e+00> : vector<8x256xf32>
    %300 = tpu.matmul %294, %299, %cst_104 {dimension_numbers = #tpu.dot_dimension_numbers<[1], [0], [0], [1], [0, 0, 1, 1], [], []>} : vector<8x64xf32>, vector<64x256xf32>, vector<8x256xf32> -> vector<8x256xf32>
    %301 = arith.addf %298, %300 : vector<8x256xf32>
    %302 = math.tanh %301 : vector<8x256xf32>
    %303 = vector.extract_strided_slice %302 {offsets = [0, 0], sizes = [8, 192], strides = [1, 1]} : vector<8x256xf32> to vector<8x192xf32>
    %cst_105 = arith.constant 5.000000e-01 : f32
    %304 = vector.broadcast %cst_105 : f32 to vector<8x192xf32>
    %305 = arith.mulf %304, %303 : vector<8x192xf32>
    %cst_106 = arith.constant 5.000000e-01 : f32
    %306 = vector.broadcast %cst_106 : f32 to vector<8x192xf32>
    %307 = arith.addf %305, %306 : vector<8x192xf32>
    %308 = vector.extract_strided_slice %307 {offsets = [0, 0], sizes = [8, 64], strides = [1, 1]} : vector<8x192xf32> to vector<8x64xf32>
    %309 = vector.extract_strided_slice %307 {offsets = [0, 64], sizes = [8, 64], strides = [1, 1]} : vector<8x192xf32> to vector<8x64xf32>
    %310 = vector.extract_strided_slice %307 {offsets = [0, 128], sizes = [8, 64], strides = [1, 1]} : vector<8x192xf32> to vector<8x64xf32>
    %311 = vector.extract_strided_slice %302 {offsets = [0, 192], sizes = [8, 64], strides = [1, 1]} : vector<8x256xf32> to vector<8x64xf32>
    %312 = arith.mulf %309, %292 : vector<8x64xf32>
    %313 = arith.mulf %308, %311 : vector<8x64xf32>
    %314 = arith.addf %312, %313 : vector<8x64xf32>
    %315 = math.tanh %314 : vector<8x64xf32>
    %316 = arith.mulf %310, %315 : vector<8x64xf32>
    %c14_i32 = arith.constant 14 : i32
    %c8_i32_107 = arith.constant 8 : i32
    %317 = arith.muli %c14_i32, %c8_i32_107 : i32
    %318 = tpu.assume_multiple %317, 8 : i32
    %319 = arith.index_cast %318 : i32 to index
    %c0_108 = arith.constant 0 : index
    %320 = vector.load %arg7[%319, %c0_108] : memref<128x256xf32, #tpu.memory_space<vmem>>, vector<8x256xf32>
    %c0_109 = arith.constant 0 : index
    %c0_110 = arith.constant 0 : index
    %321 = vector.load %arg2[%c0_109, %c0_110] : memref<64x256xf32, #tpu.memory_space<vmem>>, vector<64x256xf32>
    %cst_111 = arith.constant dense<0.000000e+00> : vector<8x256xf32>
    %322 = tpu.matmul %316, %321, %cst_111 {dimension_numbers = #tpu.dot_dimension_numbers<[1], [0], [0], [1], [0, 0, 1, 1], [], []>} : vector<8x64xf32>, vector<64x256xf32>, vector<8x256xf32> -> vector<8x256xf32>
    %323 = arith.addf %320, %322 : vector<8x256xf32>
    %324 = math.tanh %323 : vector<8x256xf32>
    %325 = vector.extract_strided_slice %324 {offsets = [0, 0], sizes = [8, 192], strides = [1, 1]} : vector<8x256xf32> to vector<8x192xf32>
    %cst_112 = arith.constant 5.000000e-01 : f32
    %326 = vector.broadcast %cst_112 : f32 to vector<8x192xf32>
    %327 = arith.mulf %326, %325 : vector<8x192xf32>
    %cst_113 = arith.constant 5.000000e-01 : f32
    %328 = vector.broadcast %cst_113 : f32 to vector<8x192xf32>
    %329 = arith.addf %327, %328 : vector<8x192xf32>
    %330 = vector.extract_strided_slice %329 {offsets = [0, 0], sizes = [8, 64], strides = [1, 1]} : vector<8x192xf32> to vector<8x64xf32>
    %331 = vector.extract_strided_slice %329 {offsets = [0, 64], sizes = [8, 64], strides = [1, 1]} : vector<8x192xf32> to vector<8x64xf32>
    %332 = vector.extract_strided_slice %329 {offsets = [0, 128], sizes = [8, 64], strides = [1, 1]} : vector<8x192xf32> to vector<8x64xf32>
    %333 = vector.extract_strided_slice %324 {offsets = [0, 192], sizes = [8, 64], strides = [1, 1]} : vector<8x256xf32> to vector<8x64xf32>
    %334 = arith.mulf %331, %314 : vector<8x64xf32>
    %335 = arith.mulf %330, %333 : vector<8x64xf32>
    %336 = arith.addf %334, %335 : vector<8x64xf32>
    %337 = math.tanh %336 : vector<8x64xf32>
    %338 = arith.mulf %332, %337 : vector<8x64xf32>
    %c15_i32 = arith.constant 15 : i32
    %c8_i32_114 = arith.constant 8 : i32
    %339 = arith.muli %c15_i32, %c8_i32_114 : i32
    %340 = tpu.assume_multiple %339, 8 : i32
    %341 = arith.index_cast %340 : i32 to index
    %c0_115 = arith.constant 0 : index
    %342 = vector.load %arg7[%341, %c0_115] : memref<128x256xf32, #tpu.memory_space<vmem>>, vector<8x256xf32>
    %c0_116 = arith.constant 0 : index
    %c0_117 = arith.constant 0 : index
    %343 = vector.load %arg2[%c0_116, %c0_117] : memref<64x256xf32, #tpu.memory_space<vmem>>, vector<64x256xf32>
    %cst_118 = arith.constant dense<0.000000e+00> : vector<8x256xf32>
    %344 = tpu.matmul %338, %343, %cst_118 {dimension_numbers = #tpu.dot_dimension_numbers<[1], [0], [0], [1], [0, 0, 1, 1], [], []>} : vector<8x64xf32>, vector<64x256xf32>, vector<8x256xf32> -> vector<8x256xf32>
    %345 = arith.addf %342, %344 : vector<8x256xf32>
    %346 = math.tanh %345 : vector<8x256xf32>
    %347 = vector.extract_strided_slice %346 {offsets = [0, 0], sizes = [8, 192], strides = [1, 1]} : vector<8x256xf32> to vector<8x192xf32>
    %cst_119 = arith.constant 5.000000e-01 : f32
    %348 = vector.broadcast %cst_119 : f32 to vector<8x192xf32>
    %349 = arith.mulf %348, %347 : vector<8x192xf32>
    %cst_120 = arith.constant 5.000000e-01 : f32
    %350 = vector.broadcast %cst_120 : f32 to vector<8x192xf32>
    %351 = arith.addf %349, %350 : vector<8x192xf32>
    %352 = vector.extract_strided_slice %351 {offsets = [0, 0], sizes = [8, 64], strides = [1, 1]} : vector<8x192xf32> to vector<8x64xf32>
    %353 = vector.extract_strided_slice %351 {offsets = [0, 64], sizes = [8, 64], strides = [1, 1]} : vector<8x192xf32> to vector<8x64xf32>
    %354 = vector.extract_strided_slice %351 {offsets = [0, 128], sizes = [8, 64], strides = [1, 1]} : vector<8x192xf32> to vector<8x64xf32>
    %355 = vector.extract_strided_slice %346 {offsets = [0, 192], sizes = [8, 64], strides = [1, 1]} : vector<8x256xf32> to vector<8x64xf32>
    %356 = arith.mulf %353, %336 : vector<8x64xf32>
    %357 = arith.mulf %352, %355 : vector<8x64xf32>
    %358 = arith.addf %356, %357 : vector<8x64xf32>
    %359 = math.tanh %358 : vector<8x64xf32>
    %360 = arith.mulf %354, %359 : vector<8x64xf32>
    %c16_i32 = arith.constant 16 : i32
    %c0_121 = arith.constant 0 : index
    %c0_122 = arith.constant 0 : index
    %361 = vector.load %arg4[%c0_121, %c0_122] : memref<64x128xf32, #tpu.memory_space<vmem>>, vector<64x128xf32>
    %cst_123 = arith.constant dense<0.000000e+00> : vector<8x128xf32>
    %362 = tpu.matmul %360, %361, %cst_123 {dimension_numbers = #tpu.dot_dimension_numbers<[1], [0], [0], [1], [0, 0, 1, 1], [], []>} : vector<8x64xf32>, vector<64x128xf32>, vector<8x128xf32> -> vector<8x128xf32>
    %c0_124 = arith.constant 0 : index
    %c0_125 = arith.constant 0 : index
    %363 = vector.load %arg5[%c0_124, %c0_125] : memref<1x128xf32, #tpu.memory_space<vmem>>, vector<1x128xf32>
    %364 = vector.broadcast %363 : vector<1x128xf32> to vector<8x128xf32>
    %365 = arith.addf %362, %364 : vector<8x128xf32>
    %c0_126 = arith.constant 0 : index
    %c0_127 = arith.constant 0 : index
    %366 = vector.load %arg6[%c0_126, %c0_127] : memref<8x128xf32, #tpu.memory_space<vmem>>, vector<8x128xf32>
    tpu.vector_store %arg6[%c0_126, %c0_127], %365 {strides = array<i32>} : memref<8x128xf32, #tpu.memory_space<vmem>>, vector<8x128xf32>,
    return
  }
}

</mosaic_0001>

<bundles_post_ra>
// kernel: tpu_custom_call.1
= control target key start
LH: loop header
LB: loop body
LE: loop exit
PB: predicated region body
PF: predicated region fallthrough
CT: control target
= control target key end

     0   :  { %11 = vsyncpa [#allocation4], 0  ;;  %s3254_s0 = inlined_call_operand.vmem [shape: f32[128,12], index: 0, kind: input, shape index: {}]   ;;  %s3255_s1 = inlined_call_operand.hbm [shape: f32[12,256], index: 1, kind: input, shape index: {}]   ;;  %s3256_s2 = inlined_call_operand.vmem [shape: f32[64,256], index: 2, kind: input, shape index: {}]   ;;  %s3257_s3 = inlined_call_operand.vmem [shape: f32[1,256], index: 3, kind: input, shape index: {}]   ;;  %s3258_s4 = inlined_call_operand.hbm [shape: f32[64,128], index: 4, kind: input, shape index: {}]   ;;  %s3259_s5 = inlined_call_operand.vmem [shape: f32[1,128], index: 5, kind: input, shape index: {}]   ;;  %s3260_s6 = inlined_call_operand.hbm [shape: f32[8,128], index: 6, kind: output, shape index: {}]  }
   0x1   :  { %12 = vsyncpa [#allocation7], 0 }
   0x2   :  { %13 = vsyncpa [#allocation5], 0  ;;  %s2715_s21 = smov [#allocation3]   ;;  %s2643_s25 = scalar_lea.hbm %s3255_s1, 512 }
   0x3   :  { %s21_s22 = sshll.u32 %s2715_s21, 4  ;;  %p2644_p0 = scmp.ne.s32.totalorder %s3255_s1, %s2643_s25  ;;  %s22_s22 = int_to_ptr.vmem [resolvable:$true] %s21_s22 }
   0x4   :  { %p2647_p1 = scmp.lt.u32.totalorder %s2643_s25, %s3255_s1 }
   0x6   :  { %p2649_p2 = pnand %p2647_p1, %p2644_p0 }
   0x8   :  { %2652 = shalt.err (!%p2649_p2)
}
   0x9   :  { %s2653_s30 = scalar_lea.vmem %s22_s22, 512  ;;  %p2658_p4 = scmp.lt.s32.totalorder %s22_s22, %s22_s22 }
   0xa   :  { %p2654_p3 = scmp.ne.s32.totalorder %s22_s22, %s2653_s30  ;;  %p2659_p5 = scmp.lt.s32.totalorder %s2653_s30, %s2653_s30 }
   0xc   :  { %p2660_p6 = por %p2659_p5, %p2658_p4 }
   0xe   :  { %p2661_p7 = pnand %p2660_p6, %p2654_p3 }
  0x10   :  { %2664 = shalt.err (!%p2661_p7)
}
  0x11   :  { %s2716_s7 = smov 256   ;;  %s2717_s8 = smov 16  }
  0x12   :  { %27 = dma.hbm_to_vmem [thread:$0]  %s3255_s1, 512, %s22_s22, [#allocation4], %s2716_s7, %s2716_s7, %s2717_s8  }
  0x13   :  { %s2718_s11 = smov [#allocation6]   ;;  %s2665_s15 = scalar_lea.hbm %s3258_s4, 1024 }
  0x14   :  { %s37_s12 = sshll.u32 %s2718_s11, 4  ;;  %p2666_p8 = scmp.ne.s32.totalorder %s3258_s4, %s2665_s15  ;;  %s38_s12 = int_to_ptr.vmem [resolvable:$true] %s37_s12 }
  0x15   :  { %p2669_p9 = scmp.lt.u32.totalorder %s2665_s15, %s3258_s4 }
  0x17   :  { %p2671_p10 = pnand %p2669_p9, %p2666_p8 }
  0x19   :  { %2674 = shalt.err (!%p2671_p10)
}
  0x1a   :  { %s2675_s20 = scalar_lea.vmem %s38_s12, 1024  ;;  %p2680_p12 = scmp.lt.s32.totalorder %s38_s12, %s38_s12 }
  0x1b   :  { %p2676_p11 = scmp.ne.s32.totalorder %s38_s12, %s2675_s20  ;;  %p2681_p13 = scmp.lt.s32.totalorder %s2675_s20, %s2675_s20 }
  0x1d   :  { %p2682_p0 = por %p2681_p13, %p2680_p12 }
  0x1f   :  { %p2683_p1 = pnand %p2682_p0, %p2676_p11 }
  0x21   :  { %2686 = shalt.err (!%p2683_p1)
}
  0x22   :  { %s2719_s1 = smov 128   ;;  %s2720_s21 = smov 8  }
  0x23   :  { %43 = dma.hbm_to_vmem [thread:$0]  %s3258_s4, 1024, %s38_s12, [#allocation7], %s2719_s1, %s2719_s1, %s2720_s21  }
  0x24   :  { %2709 = dma.done.wait [#allocation4], 512  }
  0x25   :  { %2710 = vsyncadd [#allocation4], 4294966784 }
  0x26   :  { %2711 = dma.done.wait [#allocation7], 1024  }
  0x27   :  { %2712 = vsyncadd [#allocation7], 4294966272  ;;  %v2721_v0 = vmov 0.0   ;;  %vm133_vm0 = vcmask 1043456   ;;  %vm2722_vm1 = vmmov 1   ;;  %v69_v1 = vld [vmem:[#allocation3 + $0x8] sm:$0xff]  ;;  %v74_v61 = vlaneseq }
  0x28   :  { %204 = vmatprep.mubr.f32.mxu1 %v2721_v0  ;;  %1046 = vmatprep.mubr.f32.mxu0 %v2721_v0  ;;  %vm2198_vm2 = vmpackc.low %vm133_vm0, %vm2722_vm1  ;;  %v71_v2 = vld [vmem:[#allocation3 + $0x18] sm:$0xf]  ;;  %v68_v3 = vld [vmem:[#allocation3] sm:$0xff]  ;;  %vm84_vm3 = vcmask 97280   ;;  %s2723_s11 = smov 64   ;;  %vm354_vm4 = vcmask 523264  }
  0x29   :  { %v2197_v4 = vpack.c.bf16 %v71_v2, %v69_v1  ;;  %v70_v5 = vld [vmem:[#allocation3 + $0x10] sm:$0xf]  ;;  %v339_v6 = vld [vmem:[%s3256_s2 + $0x8] sm:$0xff]  ;;  %v341_v8 = vld [vmem:[%s3256_s2 + $0x18] sm:$0xff]  ;;  %v75_v1 = vshrl.u32 %v74_v61, 7  ;;  %vm2725_vm5 = vmmov 0  }
  0x2a   :  { %v2200_v7 = vpack.c.bf16 %v70_v5, %v68_v3  ;;  %v338_v9 = vld [vmem:[%s3256_s2] sm:$0xff]  ;;  %v340_v10 = vld [vmem:[%s3256_s2 + $0x10] sm:$0xff]  ;;  %v2800_v11 = vpack.c.bf16 %v341_v8, %v339_v6  ;;  %v343_v14 = vld [vmem:[%s3256_s2 + $0x28] sm:$0xff] }
  0x2b   :  { %2199 = vmatprep.subr.msk.bf16.mxu1 %vm2198_vm2, %v2197_v4  ;;  %v52_v12 = vld [vmem:[%s3254_s0] sm:$0xff]  ;;  %v2805_v13 = vpack.c.bf16 %v340_v10, %v338_v9  ;;  %v345_v15 = vld [vmem:[%s3256_s2 + $0x38] sm:$0xff]  ;;  %v344_v18 = vld [vmem:[%s3256_s2 + $0x30] sm:$0xff]  ;;  %v80_v4 = vsub.s32 1, %v75_v1 }
  0x2c   :  { %2202 = vmatpush1.bf16.msk.msra.mxu1 %vm2198_vm2, %v2200_v7  ;;  %v2814_v16 = vpack.c.bf16 %v345_v15, %v343_v14  ;;  %v342_v17 = vld [vmem:[%s3256_s2 + $0x20] sm:$0xff]  ;;  %2300 = vmatprep.subr.bf16.mxu0 %v2800_v11  ;;  %v347_v19 = vld [vmem:[%s3256_s2 + $0x48] sm:$0xff]  ;;  %v349_v20 = vld [vmem:[%s3256_s2 + $0x58] sm:$0xff]  ;;  %v76_v15 = vsub.s32 0, %v75_v1 }
  0x2d   :  { %2204 = vmatprep.subr.bf16.mxu1 %v2800_v11  ;;  %2302 = vmatpush1.bf16.msra.mxu0 %v2805_v13  ;;  %v53_v21 = vld [vmem:[%s3254_s0 + $0x8] sm:$0xff]  ;;  %v2837_v22 = vpack.c.bf16 %v344_v18, %v342_v17  ;;  %v2840_v23 = vpack.c.bf16 %v349_v20, %v347_v19  ;;  %v346_v24 = vld [vmem:[%s3256_s2 + $0x40] sm:$0xff]  ;;  %v348_v25 = vld [vmem:[%s3256_s2 + $0x50] sm:$0xff] }
  0x2e   :  { %2304 = vmatprep.subr.bf16.mxu0 %v2814_v16  ;;  %v351_v26 = vld [vmem:[%s3256_s2 + $0x68] sm:$0xff]  ;;  %v353_v27 = vld [vmem:[%s3256_s2 + $0x78] sm:$0xff]  ;;  %v54_v28 = vld [vmem:[%s3254_s0 + $0x10] sm:$0xff]  ;;  %v2862_v29 = vpack.c.bf16 %v348_v25, %v346_v24 }
  0x2f   :  { %2136 = vmatmul.mubr.msk.f32.vlgmr.msra.gmra.mrb[0].mxu1 %vm84_vm3, %v52_v12  ;;  %v2865_v30 = vpack.c.bf16 %v353_v27, %v351_v26  ;;  %v350_v31 = vld [vmem:[%s3256_s2 + $0x60] sm:$0xff]  ;;  %v352_v32 = vld [vmem:[%s3256_s2 + $0x70] sm:$0xff]  ;;  %v55_v33 = vld [vmem:[%s3254_s0 + $0x18] sm:$0xff]  ;;  %s2726_s2 = smov [#allocation8]  }
  0x30   :  { %2206 = vmatpush1.bf16.msra.mxu1 %v2805_v13  ;;  %210 = vmatprep.mubr.f32.mxu1 %v2721_v0  ;;  %v2881_v34 = vpack.c.bf16 %v352_v32, %v350_v31  ;;  %v56_v35 = vld [vmem:[%s3254_s0 + $0x20] sm:$0xff]  ;;  %v57_v36 = vld [vmem:[%s3254_s0 + $0x28] sm:$0xff]  ;;  %v58_v37 = vld [vmem:[%s3254_s0 + $0x30] sm:$0xff]  ;;  %s2109_s13 = sshll.u32 %s2726_s2, 4  ;;  %s2110_s13 = int_to_ptr.vmem [resolvable:$true] %s2109_s13 }
  0x31   :  { %2208 = vmatprep.subr.bf16.mxu1 %v2814_v16  ;;  %2306 = vmatpush1.bf16.msra.mxu0 %v2837_v22  ;;  %v59_v38 = vld [vmem:[%s3254_s0 + $0x38] sm:$0xff]  ;;  %v60_v39 = vld [vmem:[%s3254_s0 + $0x40] sm:$0xff]  ;;  %v61_v40 = vld [vmem:[%s3254_s0 + $0x48] sm:$0xff]  ;;  %s2687_s14 = scalar_lea.vmem %s2110_s13, 128  ;;  %p2692_p3 = scmp.lt.s32.totalorder %s2110_s13, %s2110_s13 }
  0x32   :  { %2308 = vmatprep.subr.bf16.mxu0 %v2840_v23  ;;  %v62_v41 = vld [vmem:[%s3254_s0 + $0x50] sm:$0xff]  ;;  %v63_v42 = vld [vmem:[%s3254_s0 + $0x58] sm:$0xff]  ;;  %v64_v43 = vld [vmem:[%s3254_s0 + $0x60] sm:$0xff]  ;;  %p2688_p2 = scmp.ne.s32.totalorder %s2110_s13, %s2687_s14  ;;  %p2693_p4 = scmp.lt.s32.totalorder %s2687_s14, %s2687_s14 }
  0x33   :  { %2137 = vmatmul.mubr.msk.f32.gmra.mrb[2].mxu1 %vm84_vm3, %v53_v21  ;;  %v65_v44 = vld [vmem:[%s3254_s0 + $0x68] sm:$0xff]  ;;  %v66_v45 = vld [vmem:[%s3254_s0 + $0x70] sm:$0xff]  ;;  %v67_v46 = vld [vmem:[%s3254_s0 + $0x78] sm:$0xff] }
  0x34   :  { %216 = vmatprep.mubr.f32.mxu1 %v2721_v0  ;;  %2210 = vmatpush1.bf16.msra.mxu1 %v2837_v22  ;;  %v72_v6 = vld [vmem:[%s3257_s3] sm:$0x3]  ;;  %p2694_p5 = por %p2693_p4, %p2692_p3 }
  0x35   :  { %2212 = vmatprep.subr.bf16.mxu1 %v2840_v23  ;;  %2310 = vmatpush1.bf16.msra.mxu0 %v2862_v29  ;;  %v3003_v8 = vrot.slane %v72_v6, %v80_v4  ;;  %v3007_v17 = vrot.slane %v72_v6, %v76_v15 }
  0x36   :  { %2312 = vmatprep.subr.bf16.mxu0 %v2865_v30  ;;  %p2695_p6 = pnand %p2694_p5, %p2688_p2 }
  0x37   :  { %2138 = vmatmul.mubr.msk.f32.gmra.mrb[4].mxu1 %vm84_vm3, %v54_v28 }
  0x38   :  { %222 = vmatprep.mubr.f32.mxu1 %v2721_v0  ;;  %2214 = vmatpush1.bf16.msra.mxu1 %v2862_v29 }
  0x39   :  { %2216 = vmatprep.subr.bf16.mxu1 %v2865_v30  ;;  %2314 = vmatpush1.bf16.msra.mxu0 %v2881_v34 }
  0x3a   :  { %2316 = vmatprep.subr.bf16.mxu0 %v2800_v11 }
  0x3b   :  { %2139 = vmatmul.mubr.msk.f32.gmra.mrb[6].mxu1 %vm84_vm3, %v55_v33 }
  0x3c   :  { %228 = vmatprep.mubr.f32.mxu1 %v2721_v0  ;;  %2218 = vmatpush1.bf16.msra.mxu1 %v2881_v34 }
  0x3d   :  { %2220 = vmatprep.subr.bf16.mxu1 %v2800_v11 }
  0x3f   :  { %2140 = vmatmul.mubr.msk.f32.gmra.mrb[8].mxu1 %vm84_vm3, %v56_v35 }
  0x40   :  { %234 = vmatprep.mubr.f32.mxu1 %v2721_v0 }
  0x43   :  { %2141 = vmatmul.mubr.msk.f32.gmra.mrb[10].mxu1 %vm84_vm3, %v57_v36 }
  0x44   :  { %240 = vmatprep.mubr.f32.mxu1 %v2721_v0 }
  0x47   :  { %2142 = vmatmul.mubr.msk.f32.gmra.mrb[12].mxu1 %vm84_vm3, %v58_v37 }
  0x48   :  { %246 = vmatprep.mubr.f32.mxu1 %v2721_v0 }
  0x4b   :  { %2143 = vmatmul.mubr.msk.f32.gmra.mrb[14].mxu1 %vm84_vm3, %v59_v38 }
  0x4c   :  { %252 = vmatprep.mubr.f32.mxu1 %v2721_v0 }
  0x4f   :  { %2144 = vmatmul.mubr.msk.f32.gmra.mrb[16].mxu1 %vm84_vm3, %v60_v39 }
  0x50   :  { %258 = vmatprep.mubr.f32.mxu1 %v2721_v0 }
  0x53   :  { %2145 = vmatmul.mubr.msk.f32.gmra.mrb[18].mxu1 %vm84_vm3, %v61_v40 }
  0x54   :  { %264 = vmatprep.mubr.f32.mxu1 %v2721_v0 }
  0x57   :  { %2146 = vmatmul.mubr.msk.f32.gmra.mrb[20].mxu1 %vm84_vm3, %v62_v41 }
  0x58   :  { %270 = vmatprep.mubr.f32.mxu1 %v2721_v0 }
  0x5b   :  { %2147 = vmatmul.mubr.msk.f32.gmra.mrb[22].mxu1 %vm84_vm3, %v63_v42 }
  0x5c   :  { %276 = vmatprep.mubr.f32.mxu1 %v2721_v0 }
  0x5f   :  { %2148 = vmatmul.mubr.msk.f32.gmra.mrb[24].mxu1 %vm84_vm3, %v64_v43 }
  0x60   :  { %282 = vmatprep.mubr.f32.mxu1 %v2721_v0 }
  0x63   :  { %2149 = vmatmul.mubr.msk.f32.gmra.mrb[26].mxu1 %vm84_vm3, %v65_v44 }
  0x64   :  { %288 = vmatprep.mubr.f32.mxu1 %v2721_v0 }
  0x67   :  { %2150 = vmatmul.mubr.msk.f32.gmra.mrb[28].mxu1 %vm84_vm3, %v66_v45 }
  0x68   :  { %294 = vmatprep.mubr.f32.mxu1 %v2721_v0 }
  0x6b   :  { %2151 = vmatmul.mubr.msk.f32.gmra.mrb[30].mxu1 %vm84_vm3, %v67_v46 }
  0x6c   :  { %422 = vmatprep.mubr.f32.mxu1 %v2721_v0 }
  0x6f   :  { %423 = vmatmul.mubr.f32.vlgmr.msra.gmra.mrb[0].mxu1 %v2721_v0 }
  0x70   :  { %2222 = vmatpush1.bf16.msra.mxu1 %v2805_v13  ;;  %526 = vmatprep.mubr.f32.mxu1 %v2721_v0 }
  0x71   :  { %2224 = vmatprep.subr.bf16.mxu1 %v2814_v16 }
  0x74   :  { %2226 = vmatpush1.bf16.msra.mxu1 %v2837_v22 }
  0x75   :  { %2228 = vmatprep.subr.bf16.mxu1 %v2840_v23 }
  0x78   :  { %2230 = vmatpush1.bf16.msra.mxu1 %v2862_v29 }
  0x79   :  { %2232 = vmatprep.subr.bf16.mxu1 %v2865_v30 }
  0x7c   :  { %2234 = vmatpush1.bf16.msra.mxu1 %v2881_v34 }
  0x7d   :  { %2236 = vmatprep.subr.bf16.mxu1 %v2800_v11 }
 0x11a   :  { %v2960_v47 = vpop.f32.mrb[12].mxu1 }
 0x11b   :  { %v2962_v48 = vpop.f32.mrb[13].mxu1 }
 0x11e   :  { %v2964_v49 = vpop.f32.mrb[14].mxu1 }
 0x11f   :  { %v2966_v50 = vpop.f32.mrb[15].mxu1 }
 0x122   :  { %v2968_v51 = vpop.f32.mrb[16].mxu1 }
 0x123   :  { %v2970_v52 = vpop.f32.mrb[17].mxu1 }
 0x126   :  { %v2972_v53 = vpop.f32.mrb[18].mxu1 }
 0x127   :  { %v2974_v54 = vpop.f32.mrb[19].mxu1 }
 0x12a   :  { %v2976_v55 = vpop.f32.mrb[20].mxu1 }
 0x12b   :  { %v2978_v56 = vpop.f32.mrb[21].mxu1 }
 0x12e   :  { %v2980_v57 = vpop.f32.mrb[22].mxu1 }
 0x12f   :  { %v2982_v58 = vpop.f32.mrb[23].mxu1 }
 0x132   :  { %v2984_v59 = vpop.f32.mrb[24].mxu1 }
 0x133   :  { %v2986_v60 = vpop.f32.mrb[25].mxu1 }
 0x136   :  { %v2988_v62 = vpop.f32.mrb[26].mxu1 }
 0x137   :  { %v2990_v63 = vpop.f32.mrb[27].mxu1 }
 0x13a   :  { %v2992_v2 = vpop.f32.mrb[28].mxu1 }
 0x13b   :  { %v2994_v3 = vpop.f32.mrb[29].mxu1 }
 0x13e   :  { %v2996_v5 = vpop.f32.mrb[30].mxu1 }
 0x13f   :  { %v3001_v7 = vpop.f32.mrb[31].mxu1 }
 0x142   :  { %v424_v9 = vpop.f32.mrb[0].mxu1 }
 0x143   :  { %v426_v10 = vpop.f32.mrb[1].mxu1  ;;  %v2471_v18 = vadd.f32 %v424_v9, %v3007_v17 }
 0x144   :  { %v2472_v12 = vadd.f32 %v426_v10, %v3003_v8 }
 0x146   :  { %2547 = vtanh.f32 %v2472_v12 }
 0x147   :  { %2549 = vtanh.f32 %v2471_v18 }
 0x150   :  { %v2548_v14 = vpop.eup %2547 }
 0x151   :  { %439 = vrot.lane.b32.xlu0 %v2548_v14, %s2723_s11  ;;  %v2550_v19 = vpop.eup %2549  ;;  %v434_v32 = vmul.f32 0.5, %v2548_v14 }
 0x152   :  { %v433_v20 = vmul.f32 0.5, %v2550_v19 }
 0x153   :  { %v436_v33 = vadd.f32 0.5, %v434_v32 }
 0x154   :  { %v435_v21 = vadd.f32 0.5, %v433_v20 }
 0x156   :  { %v437_v26 = vmul.f32 0.0, %v435_v21 }
 0x1c3   :  { %v440_v24 = vpop.permute.xlu0 %439 }
 0x1c4   :  { %v442_v25 = vmul.f32 %v440_v24, %v435_v21 }
 0x1c6   :  { %444 = vrot.lane.b32.xlu0 %v442_v25, %s2723_s11 }
 0x238   :  { %v445_v27 = vpop.permute.xlu0 %444 }
 0x239   :  { %v447_v28 = vadd.f32 %v445_v27, %v437_v26 }
 0x23b   :  { %2551 = vtanh.f32 %v447_v28 }
 0x245   :  { %v2552_v31 = vpop.eup %2551 }
 0x246   :  { %450 = vrot.lane.b32.xlu1 %v2552_v31, %s2723_s11 }
 0x2b8   :  { %v451_v35 = vpop.permute.xlu1 %450 }
 0x2b9   :  { %v453_v36 = vmul.f32 %v451_v35, %v436_v33 }
 0x2bb   :  { %2152 = vmatmul.mubr.msk.f32.vlgmr.msra.gmra.mrb[2].mxu1 %vm354_vm4, %v453_v36 }
 0x2bc   :  { %2238 = vmatpush1.bf16.msra.mxu1 %v2805_v13  ;;  %630 = vmatprep.mubr.f32.mxu1 %v2721_v0 }
 0x2bd   :  { %2240 = vmatprep.subr.bf16.mxu1 %v2814_v16 }
 0x2c0   :  { %2242 = vmatpush1.bf16.msra.mxu1 %v2837_v22 }
 0x2c1   :  { %2244 = vmatprep.subr.bf16.mxu1 %v2840_v23 }
 0x2c4   :  { %2246 = vmatpush1.bf16.msra.mxu1 %v2862_v29 }
 0x2c5   :  { %2248 = vmatprep.subr.bf16.mxu1 %v2865_v30 }
 0x2c8   :  { %2250 = vmatpush1.bf16.msra.mxu1 %v2881_v34 }
 0x2c9   :  { %2252 = vmatprep.subr.bf16.mxu1 %v2800_v11 }
 0x38e   :  { %v528_v37 = vpop.f32.mrb[2].mxu1 }
 0x38f   :  { %v530_v38 = vpop.f32.mrb[3].mxu1  ;;  %v2473_v41 = vadd.f32 %v528_v37, %v3007_v17 }
 0x390   :  { %v2474_v39 = vadd.f32 %v530_v38, %v3003_v8 }
 0x392   :  { %2553 = vtanh.f32 %v2474_v39 }
 0x393   :  { %2555 = vtanh.f32 %v2473_v41 }
 0x39c   :  { %v2554_v40 = vpop.eup %2553 }
 0x39d   :  { %543 = vrot.lane.b32.xlu1 %v2554_v40, %s2723_s11  ;;  %v2556_v42 = vpop.eup %2555  ;;  %v538_v9 = vmul.f32 0.5, %v2554_v40 }
 0x39e   :  { %v537_v43 = vmul.f32 0.5, %v2556_v42 }
 0x39f   :  { %v540_v10 = vadd.f32 0.5, %v538_v9 }
 0x3a0   :  { %v539_v44 = vadd.f32 0.5, %v537_v43 }
 0x3a2   :  { %v541_v61 = vmul.f32 %v539_v44, %v447_v28 }
 0x40f   :  { %v544_v45 = vpop.permute.xlu1 %543 }
 0x410   :  { %v546_v46 = vmul.f32 %v544_v45, %v539_v44 }
 0x412   :  { %548 = vrot.lane.b32.xlu0 %v546_v46, %s2723_s11 }
 0x484   :  { %v549_v1 = vpop.permute.xlu0 %548 }
 0x485   :  { %v551_v4 = vadd.f32 %v549_v1, %v541_v61 }
 0x487   :  { %2557 = vtanh.f32 %v551_v4 }
 0x491   :  { %v2558_v6 = vpop.eup %2557 }
 0x492   :  { %554 = vrot.lane.b32.xlu1 %v2558_v6, %s2723_s11 }
 0x504   :  { %v555_v12 = vpop.permute.xlu1 %554 }
 0x505   :  { %v557_v14 = vmul.f32 %v555_v12, %v540_v10 }
 0x507   :  { %2153 = vmatmul.mubr.msk.f32.vlgmr.msra.gmra.mrb[4].mxu1 %vm354_vm4, %v557_v14 }
 0x508   :  { %2254 = vmatpush1.bf16.msra.mxu1 %v2805_v13  ;;  %734 = vmatprep.mubr.f32.mxu1 %v2721_v0 }
 0x509   :  { %2256 = vmatprep.subr.bf16.mxu1 %v2814_v16 }
 0x50c   :  { %2258 = vmatpush1.bf16.msra.mxu1 %v2837_v22 }
 0x50d   :  { %2260 = vmatprep.subr.bf16.mxu1 %v2840_v23 }
 0x510   :  { %2262 = vmatpush1.bf16.msra.mxu1 %v2862_v29 }
 0x511   :  { %2264 = vmatprep.subr.bf16.mxu1 %v2865_v30 }
 0x514   :  { %2266 = vmatpush1.bf16.msra.mxu1 %v2881_v34 }
 0x515   :  { %2268 = vmatprep.subr.bf16.mxu1 %v2800_v11 }
 0x5da   :  { %v632_v15 = vpop.f32.mrb[4].mxu1 }
 0x5db   :  { %v634_v18 = vpop.f32.mrb[5].mxu1  ;;  %v2475_v21 = vadd.f32 %v632_v15, %v3007_v17 }
 0x5dc   :  { %v2476_v19 = vadd.f32 %v634_v18, %v3003_v8 }
 0x5de   :  { %2559 = vtanh.f32 %v2476_v19 }
 0x5df   :  { %2561 = vtanh.f32 %v2475_v21 }
 0x5e8   :  { %v2560_v20 = vpop.eup %2559 }
 0x5e9   :  { %647 = vrot.lane.b32.xlu0 %v2560_v20, %s2723_s11  ;;  %v2562_v24 = vpop.eup %2561  ;;  %v642_v36 = vmul.f32 0.5, %v2560_v20 }
 0x5ea   :  { %v641_v25 = vmul.f32 0.5, %v2562_v24 }
 0x5eb   :  { %v644_v37 = vadd.f32 0.5, %v642_v36 }
 0x5ec   :  { %v643_v26 = vadd.f32 0.5, %v641_v25 }
 0x5ee   :  { %v645_v31 = vmul.f32 %v643_v26, %v551_v4 }
 0x65b   :  { %v648_v27 = vpop.permute.xlu0 %647 }
 0x65c   :  { %v650_v28 = vmul.f32 %v648_v27, %v643_v26 }
 0x65e   :  { %652 = vrot.lane.b32.xlu1 %v650_v28, %s2723_s11 }
 0x6d0   :  { %v653_v32 = vpop.permute.xlu1 %652 }
 0x6d1   :  { %v655_v33 = vadd.f32 %v653_v32, %v645_v31 }
 0x6d3   :  { %2563 = vtanh.f32 %v655_v33 }
 0x6dd   :  { %v2564_v35 = vpop.eup %2563 }
 0x6de   :  { %658 = vrot.lane.b32.xlu0 %v2564_v35, %s2723_s11 }
 0x750   :  { %v659_v38 = vpop.permute.xlu0 %658 }
 0x751   :  { %v661_v39 = vmul.f32 %v659_v38, %v644_v37 }
 0x753   :  { %2154 = vmatmul.mubr.msk.f32.vlgmr.msra.gmra.mrb[6].mxu1 %vm354_vm4, %v661_v39 }
 0x754   :  { %2270 = vmatpush1.bf16.msra.mxu1 %v2805_v13  ;;  %838 = vmatprep.mubr.f32.mxu1 %v2721_v0 }
 0x755   :  { %2272 = vmatprep.subr.bf16.mxu1 %v2814_v16 }
 0x758   :  { %2274 = vmatpush1.bf16.msra.mxu1 %v2837_v22 }
 0x759   :  { %2276 = vmatprep.subr.bf16.mxu1 %v2840_v23 }
 0x75c   :  { %2278 = vmatpush1.bf16.msra.mxu1 %v2862_v29 }
 0x75d   :  { %2280 = vmatprep.subr.bf16.mxu1 %v2865_v30 }
 0x760   :  { %2282 = vmatpush1.bf16.msra.mxu1 %v2881_v34 }
 0x761   :  { %2284 = vmatprep.subr.bf16.mxu1 %v2800_v11 }
 0x826   :  { %v736_v40 = vpop.f32.mrb[6].mxu1 }
 0x827   :  { %v738_v41 = vpop.f32.mrb[7].mxu1  ;;  %v2477_v44 = vadd.f32 %v736_v40, %v3007_v17 }
 0x828   :  { %v2478_v42 = vadd.f32 %v738_v41, %v3003_v8 }
 0x82a   :  { %2565 = vtanh.f32 %v2478_v42 }
 0x82b   :  { %2567 = vtanh.f32 %v2477_v44 }
 0x834   :  { %v2566_v43 = vpop.eup %2565 }
 0x835   :  { %751 = vrot.lane.b32.xlu1 %v2566_v43, %s2723_s11  ;;  %v2568_v45 = vpop.eup %2567  ;;  %v746_v14 = vmul.f32 0.5, %v2566_v43 }
 0x836   :  { %v745_v46 = vmul.f32 0.5, %v2568_v45 }
 0x837   :  { %v748_v15 = vadd.f32 0.5, %v746_v14 }
 0x838   :  { %v747_v61 = vadd.f32 0.5, %v745_v46 }
 0x83a   :  { %v749_v6 = vmul.f32 %v747_v61, %v655_v33 }
 0x8a7   :  { %v752_v1 = vpop.permute.xlu1 %751 }
 0x8a8   :  { %v754_v4 = vmul.f32 %v752_v1, %v747_v61 }
 0x8aa   :  { %756 = vrot.lane.b32.xlu0 %v754_v4, %s2723_s11 }
 0x91c   :  { %v757_v9 = vpop.permute.xlu0 %756 }
 0x91d   :  { %v759_v10 = vadd.f32 %v757_v9, %v749_v6 }
 0x91f   :  { %2569 = vtanh.f32 %v759_v10 }
 0x929   :  { %v2570_v12 = vpop.eup %2569 }
 0x92a   :  { %762 = vrot.lane.b32.xlu1 %v2570_v12, %s2723_s11 }
 0x99c   :  { %v763_v18 = vpop.permute.xlu1 %762 }
 0x99d   :  { %v765_v19 = vmul.f32 %v763_v18, %v748_v15 }
 0x99f   :  { %2155 = vmatmul.mubr.msk.f32.vlgmr.msra.gmra.mrb[8].mxu1 %vm354_vm4, %v765_v19 }
 0x9a0   :  { %2286 = vmatpush1.bf16.msra.mxu1 %v2805_v13  ;;  %942 = vmatprep.mubr.f32.mxu1 %v2721_v0 }
 0x9a1   :  { %2288 = vmatprep.subr.bf16.mxu1 %v2814_v16 }
 0x9a4   :  { %2290 = vmatpush1.bf16.msra.mxu1 %v2837_v22 }
 0x9a5   :  { %2292 = vmatprep.subr.bf16.mxu1 %v2840_v23 }
 0x9a8   :  { %2294 = vmatpush1.bf16.msra.mxu1 %v2862_v29 }
 0x9a9   :  { %2296 = vmatprep.subr.bf16.mxu1 %v2865_v30 }
 0x9ac   :  { %2298 = vmatpush1.bf16.msra.mxu1 %v2881_v34 }
 0xa72   :  { %v840_v20 = vpop.f32.mrb[8].mxu1 }
 0xa73   :  { %v842_v21 = vpop.f32.mrb[9].mxu1  ;;  %v2479_v26 = vadd.f32 %v840_v20, %v3007_v17 }
 0xa74   :  { %v2480_v24 = vadd.f32 %v842_v21, %v3003_v8 }
 0xa76   :  { %2571 = vtanh.f32 %v2480_v24 }
 0xa77   :  { %2573 = vtanh.f32 %v2479_v26  ;;  %v245_v26 = vadd.f32 %v2962_v48, %v3003_v8 }
 0xa80   :  { %v2572_v25 = vpop.eup %2571 }
 0xa81   :  { %855 = vrot.lane.b32.xlu0 %v2572_v25, %s2723_s11  ;;  %v2574_v27 = vpop.eup %2573  ;;  %v850_v39 = vmul.f32 0.5, %v2572_v25  ;;  %v243_v25 = vadd.f32 %v2960_v47, %v3007_v17 }
 0xa82   :  { %v849_v28 = vmul.f32 0.5, %v2574_v27 }
 0xa83   :  { %v852_v40 = vadd.f32 0.5, %v850_v39 }
 0xa84   :  { %v851_v31 = vadd.f32 0.5, %v849_v28 }
 0xa86   :  { %v853_v35 = vmul.f32 %v851_v31, %v759_v10 }
 0xaf3   :  { %v856_v32 = vpop.permute.xlu0 %855 }
 0xaf4   :  { %v858_v33 = vmul.f32 %v856_v32, %v851_v31 }
 0xaf6   :  { %860 = vrot.lane.b32.xlu1 %v858_v33, %s2723_s11 }
 0xb68   :  { %v861_v36 = vpop.permute.xlu1 %860 }
 0xb69   :  { %v863_v37 = vadd.f32 %v861_v36, %v853_v35 }
 0xb6b   :  { %2575 = vtanh.f32 %v863_v37 }
 0xb75   :  { %v2576_v38 = vpop.eup %2575 }
 0xb76   :  { %866 = vrot.lane.b32.xlu0 %v2576_v38, %s2723_s11 }
 0xbe8   :  { %v867_v41 = vpop.permute.xlu0 %866 }
 0xbe9   :  { %v869_v42 = vmul.f32 %v867_v41, %v852_v40 }
 0xbeb   :  { %2156 = vmatmul.mubr.msk.f32.vlgmr.msra.gmra.mrb[10].mxu1 %vm354_vm4, %v869_v42 }
 0xbec   :  { %2194 = vmatprep.mubr.msk.f32.mxu1 %vm2725_vm5, %v2721_v0 }
 0xcbe   :  { %v944_v43 = vpop.f32.mrb[10].mxu1 }
 0xcbf   :  { %v946_v44 = vpop.f32.mrb[11].mxu1  ;;  %v2481_v61 = vadd.f32 %v944_v43, %v3007_v17 }
 0xcc0   :  { %v2482_v45 = vadd.f32 %v946_v44, %v3003_v8 }
 0xcc2   :  { %2577 = vtanh.f32 %v2482_v45 }
 0xcc3   :  { %2579 = vtanh.f32 %v2481_v61  ;;  %v251_v61 = vadd.f32 %v2966_v50, %v3003_v8 }
 0xccc   :  { %v2578_v46 = vpop.eup %2577 }
 0xccd   :  { %959 = vrot.lane.b32.xlu1 %v2578_v46, %s2723_s11  ;;  %v2580_v1 = vpop.eup %2579  ;;  %v954_v19 = vmul.f32 0.5, %v2578_v46  ;;  %v249_v46 = vadd.f32 %v2964_v49, %v3007_v17 }
 0xcce   :  { %v953_v4 = vmul.f32 0.5, %v2580_v1 }
 0xccf   :  { %v956_v20 = vadd.f32 0.5, %v954_v19 }
 0xcd0   :  { %v955_v6 = vadd.f32 0.5, %v953_v4 }
 0xcd2   :  { %v957_v12 = vmul.f32 %v955_v6, %v863_v37 }
 0xd3f   :  { %v960_v9 = vpop.permute.xlu1 %959 }
 0xd40   :  { %v962_v10 = vmul.f32 %v960_v9, %v955_v6 }
 0xd42   :  { %964 = vrot.lane.b32.xlu0 %v962_v10, %s2723_s11 }
 0xdb4   :  { %v965_v14 = vpop.permute.xlu0 %964 }
 0xdb5   :  { %v967_v15 = vadd.f32 %v965_v14, %v957_v12 }
 0xdb7   :  { %2581 = vtanh.f32 %v967_v15 }
 0xdc1   :  { %v2582_v18 = vpop.eup %2581 }
 0xdc2   :  { %970 = vrot.lane.b32.xlu1 %v2582_v18, %s2723_s11 }
 0xe34   :  { %v971_v21 = vpop.permute.xlu1 %970 }
 0xe35   :  { %v973_v24 = vmul.f32 %v971_v21, %v956_v20 }
 0xe37   :  { %2157 = vmatmul.mubr.msk.f32.vlgmr.msra.gmra.mrb[0].mxu0 %vm354_vm4, %v973_v24 }
 0xe38   :  { %2318 = vmatpush1.bf16.msra.mxu0 %v2805_v13  ;;  %1150 = vmatprep.mubr.f32.mxu0 %v2721_v0 }
 0xe39   :  { %2320 = vmatprep.subr.bf16.mxu0 %v2814_v16 }
 0xe3c   :  { %2322 = vmatpush1.bf16.msra.mxu0 %v2837_v22 }
 0xe3d   :  { %2324 = vmatprep.subr.bf16.mxu0 %v2840_v23 }
 0xe40   :  { %2326 = vmatpush1.bf16.msra.mxu0 %v2862_v29 }
 0xe41   :  { %2328 = vmatprep.subr.bf16.mxu0 %v2865_v30 }
 0xe44   :  { %2330 = vmatpush1.bf16.msra.mxu0 %v2881_v34 }
 0xe45   :  { %2332 = vmatprep.subr.bf16.mxu0 %v2800_v11 }
 0xf0a   :  { %v1048_v27 = vpop.f32.mrb[0].mxu0 }
 0xf0b   :  { %v1053_v28 = vadd.f32 %v1048_v27, %v243_v25  ;;  %v1050_v31 = vpop.f32.mrb[1].mxu0 }
 0xf0c   :  { %v1054_v32 = vadd.f32 %v1050_v31, %v245_v26  ;;  %v257_v31 = vadd.f32 %v2970_v52, %v3003_v8 }
 0xf0e   :  { %2583 = vtanh.f32 %v1054_v32 }
 0xf0f   :  { %2585 = vtanh.f32 %v1053_v28  ;;  %v255_v28 = vadd.f32 %v2968_v51, %v3007_v17 }
 0xf18   :  { %v2584_v33 = vpop.eup %2583 }
 0xf19   :  { %1063 = vrot.lane.b32.xlu0 %v2584_v33, %s2723_s11  ;;  %v2586_v35 = vpop.eup %2585  ;;  %v1058_v42 = vmul.f32 0.5, %v2584_v33 }
 0xf1a   :  { %v1057_v36 = vmul.f32 0.5, %v2586_v35 }
 0xf1b   :  { %v1060_v43 = vadd.f32 0.5, %v1058_v42 }
 0xf1c   :  { %v1059_v37 = vadd.f32 0.5, %v1057_v36 }
 0xf1e   :  { %v1061_v47 = vmul.f32 %v1059_v37, %v967_v15 }
 0xf8b   :  { %v1064_v38 = vpop.permute.xlu0 %1063 }
 0xf8c   :  { %v1066_v39 = vmul.f32 %v1064_v38, %v1059_v37 }
 0xf8e   :  { %1068 = vrot.lane.b32.xlu1 %v1066_v39, %s2723_s11 }
0x1000   :  { %v1069_v40 = vpop.permute.xlu1 %1068 }
0x1001   :  { %v1071_v41 = vadd.f32 %v1069_v40, %v1061_v47 }
0x1003   :  { %2587 = vtanh.f32 %v1071_v41 }
0x100d   :  { %v2588_v48 = vpop.eup %2587 }
0x100e   :  { %1074 = vrot.lane.b32.xlu0 %v2588_v48, %s2723_s11 }
0x1080   :  { %v1075_v44 = vpop.permute.xlu0 %1074 }
0x1081   :  { %v1077_v45 = vmul.f32 %v1075_v44, %v1060_v43 }
0x1083   :  { %2158 = vmatmul.mubr.msk.f32.vlgmr.msra.gmra.mrb[2].mxu0 %vm354_vm4, %v1077_v45 }
0x1084   :  { %2334 = vmatpush1.bf16.msra.mxu0 %v2805_v13  ;;  %1254 = vmatprep.mubr.f32.mxu0 %v2721_v0 }
0x1085   :  { %2336 = vmatprep.subr.bf16.mxu0 %v2814_v16 }
0x1088   :  { %2338 = vmatpush1.bf16.msra.mxu0 %v2837_v22 }
0x1089   :  { %2340 = vmatprep.subr.bf16.mxu0 %v2840_v23 }
0x108c   :  { %2342 = vmatpush1.bf16.msra.mxu0 %v2862_v29 }
0x108d   :  { %2344 = vmatprep.subr.bf16.mxu0 %v2865_v30 }
0x1090   :  { %2346 = vmatpush1.bf16.msra.mxu0 %v2881_v34 }
0x1091   :  { %2348 = vmatprep.subr.bf16.mxu0 %v2800_v11 }
0x1156   :  { %v1152_v1 = vpop.f32.mrb[2].mxu0 }
0x1157   :  { %v1157_v4 = vadd.f32 %v1152_v1, %v249_v46  ;;  %v1154_v6 = vpop.f32.mrb[3].mxu0  ;;  %v263_v1 = vadd.f32 %v2974_v54, %v3003_v8 }
0x1158   :  { %v1158_v9 = vadd.f32 %v1154_v6, %v251_v61  ;;  %v261_v61 = vadd.f32 %v2972_v53, %v3007_v17 }
0x115a   :  { %2589 = vtanh.f32 %v1158_v9 }
0x115b   :  { %2591 = vtanh.f32 %v1157_v4 }
0x1164   :  { %v2590_v10 = vpop.eup %2589 }
0x1165   :  { %1167 = vrot.lane.b32.xlu1 %v2590_v10, %s2723_s11  ;;  %v2592_v12 = vpop.eup %2591  ;;  %v1162_v24 = vmul.f32 0.5, %v2590_v10 }
0x1166   :  { %v1161_v14 = vmul.f32 0.5, %v2592_v12 }
0x1167   :  { %v1164_v25 = vadd.f32 0.5, %v1162_v24 }
0x1168   :  { %v1163_v15 = vadd.f32 0.5, %v1161_v14 }
0x116a   :  { %v1165_v49 = vmul.f32 %v1163_v15, %v1071_v41 }
0x11d7   :  { %v1168_v18 = vpop.permute.xlu1 %1167 }
0x11d8   :  { %v1170_v19 = vmul.f32 %v1168_v18, %v1163_v15 }
0x11da   :  { %1172 = vrot.lane.b32.xlu0 %v1170_v19, %s2723_s11 }
0x124c   :  { %v1173_v20 = vpop.permute.xlu0 %1172 }
0x124d   :  { %v1175_v21 = vadd.f32 %v1173_v20, %v1165_v49 }
0x124f   :  { %2593 = vtanh.f32 %v1175_v21 }
0x1259   :  { %v2594_v50 = vpop.eup %2593 }
0x125a   :  { %1178 = vrot.lane.b32.xlu1 %v2594_v50, %s2723_s11 }
0x12cc   :  { %v1179_v26 = vpop.permute.xlu1 %1178 }
0x12cd   :  { %v1181_v27 = vmul.f32 %v1179_v26, %v1164_v25 }
0x12cf   :  { %2159 = vmatmul.mubr.msk.f32.vlgmr.msra.gmra.mrb[4].mxu0 %vm354_vm4, %v1181_v27  ;;  %v267_v27 = vadd.f32 %v2976_v55, %v3007_v17 }
0x12d0   :  { %2350 = vmatpush1.bf16.msra.mxu0 %v2805_v13  ;;  %1358 = vmatprep.mubr.f32.mxu0 %v2721_v0 }
0x12d1   :  { %2352 = vmatprep.subr.bf16.mxu0 %v2814_v16 }
0x12d4   :  { %2354 = vmatpush1.bf16.msra.mxu0 %v2837_v22 }
0x12d5   :  { %2356 = vmatprep.subr.bf16.mxu0 %v2840_v23 }
0x12d8   :  { %2358 = vmatpush1.bf16.msra.mxu0 %v2862_v29 }
0x12d9   :  { %2360 = vmatprep.subr.bf16.mxu0 %v2865_v30 }
0x12dc   :  { %2362 = vmatpush1.bf16.msra.mxu0 %v2881_v34 }
0x12dd   :  { %2364 = vmatprep.subr.bf16.mxu0 %v2800_v11 }
0x13a2   :  { %v1256_v32 = vpop.f32.mrb[4].mxu0 }
0x13a3   :  { %v1261_v33 = vadd.f32 %v1256_v32, %v255_v28  ;;  %v1258_v35 = vpop.f32.mrb[5].mxu0  ;;  %v269_v28 = vadd.f32 %v2978_v56, %v3003_v8 }
0x13a4   :  { %v1262_v36 = vadd.f32 %v1258_v35, %v257_v31 }
0x13a6   :  { %2595 = vtanh.f32 %v1262_v36 }
0x13a7   :  { %2597 = vtanh.f32 %v1261_v33 }
0x13b0   :  { %v2596_v37 = vpop.eup %2595 }
0x13b1   :  { %1271 = vrot.lane.b32.xlu0 %v2596_v37, %s2723_s11  ;;  %v2598_v38 = vpop.eup %2597  ;;  %v1266_v43 = vmul.f32 0.5, %v2596_v37 }
0x13b2   :  { %v1265_v39 = vmul.f32 0.5, %v2598_v38 }
0x13b3   :  { %v1268_v44 = vadd.f32 0.5, %v1266_v43 }
0x13b4   :  { %v1267_v47 = vadd.f32 0.5, %v1265_v39 }
0x13b6   :  { %v1269_v51 = vmul.f32 %v1267_v47, %v1175_v21 }
0x1423   :  { %v1272_v40 = vpop.permute.xlu0 %1271 }
0x1424   :  { %v1274_v41 = vmul.f32 %v1272_v40, %v1267_v47 }
0x1426   :  { %1276 = vrot.lane.b32.xlu1 %v1274_v41, %s2723_s11 }
0x1498   :  { %v1277_v48 = vpop.permute.xlu1 %1276 }
0x1499   :  { %v1279_v42 = vadd.f32 %v1277_v48, %v1269_v51 }
0x149b   :  { %2599 = vtanh.f32 %v1279_v42 }
0x14a5   :  { %v2600_v52 = vpop.eup %2599 }
0x14a6   :  { %1282 = vrot.lane.b32.xlu0 %v2600_v52, %s2723_s11 }
0x1518   :  { %v1283_v45 = vpop.permute.xlu0 %1282 }
0x1519   :  { %v1285_v46 = vmul.f32 %v1283_v45, %v1268_v44  ;;  %v273_v44 = vadd.f32 %v2980_v57, %v3007_v17  ;;  %v275_v45 = vadd.f32 %v2982_v58, %v3003_v8 }
0x151b   :  { %2160 = vmatmul.mubr.msk.f32.vlgmr.msra.gmra.mrb[6].mxu0 %vm354_vm4, %v1285_v46 }
0x151c   :  { %2366 = vmatpush1.bf16.msra.mxu0 %v2805_v13  ;;  %1462 = vmatprep.mubr.f32.mxu0 %v2721_v0 }
0x151d   :  { %2368 = vmatprep.subr.bf16.mxu0 %v2814_v16 }
0x1520   :  { %2370 = vmatpush1.bf16.msra.mxu0 %v2837_v22 }
0x1521   :  { %2372 = vmatprep.subr.bf16.mxu0 %v2840_v23 }
0x1524   :  { %2374 = vmatpush1.bf16.msra.mxu0 %v2862_v29 }
0x1525   :  { %2376 = vmatprep.subr.bf16.mxu0 %v2865_v30 }
0x1528   :  { %2378 = vmatpush1.bf16.msra.mxu0 %v2881_v34 }
0x1529   :  { %2380 = vmatprep.subr.bf16.mxu0 %v2800_v11 }
0x15ee   :  { %v1360_v4 = vpop.f32.mrb[6].mxu0 }
0x15ef   :  { %v1365_v6 = vadd.f32 %v1360_v4, %v261_v61  ;;  %v1362_v9 = vpop.f32.mrb[7].mxu0 }
0x15f0   :  { %v1366_v10 = vadd.f32 %v1362_v9, %v263_v1 }
0x15f2   :  { %2601 = vtanh.f32 %v1366_v10 }
0x15f3   :  { %2603 = vtanh.f32 %v1365_v6 }
0x15fc   :  { %v2602_v12 = vpop.eup %2601 }
0x15fd   :  { %1375 = vrot.lane.b32.xlu1 %v2602_v12, %s2723_s11  ;;  %v2604_v14 = vpop.eup %2603  ;;  %v1370_v50 = vmul.f32 0.5, %v2602_v12 }
0x15fe   :  { %v1369_v15 = vmul.f32 0.5, %v2604_v14 }
0x15ff   :  { %v1372_v24 = vadd.f32 0.5, %v1370_v50  ;;  %v281_v50 = vadd.f32 %v2986_v60, %v3003_v8 }
0x1600   :  { %v1371_v18 = vadd.f32 0.5, %v1369_v15 }
0x1602   :  { %v1373_v53 = vmul.f32 %v1371_v18, %v1279_v42 }
0x166f   :  { %v1376_v19 = vpop.permute.xlu1 %1375 }
0x1670   :  { %v1378_v49 = vmul.f32 %v1376_v19, %v1371_v18 }
0x1672   :  { %1380 = vrot.lane.b32.xlu0 %v1378_v49, %s2723_s11 }
0x16e4   :  { %v1381_v20 = vpop.permute.xlu0 %1380 }
0x16e5   :  { %v1383_v21 = vadd.f32 %v1381_v20, %v1373_v53 }
0x16e7   :  { %2605 = vtanh.f32 %v1383_v21 }
0x16f1   :  { %v2606_v54 = vpop.eup %2605 }
0x16f2   :  { %1386 = vrot.lane.b32.xlu1 %v2606_v54, %s2723_s11  ;;  %v279_v54 = vadd.f32 %v2984_v59, %v3007_v17 }
0x1764   :  { %v1387_v25 = vpop.permute.xlu1 %1386 }
0x1765   :  { %v1389_v26 = vmul.f32 %v1387_v25, %v1372_v24 }
0x1767   :  { %2161 = vmatmul.mubr.msk.f32.vlgmr.msra.gmra.mrb[8].mxu0 %vm354_vm4, %v1389_v26 }
0x1768   :  { %2382 = vmatpush1.bf16.msra.mxu0 %v2805_v13  ;;  %1566 = vmatprep.mubr.f32.mxu0 %v2721_v0 }
0x1769   :  { %2384 = vmatprep.subr.bf16.mxu0 %v2814_v16 }
0x176c   :  { %2386 = vmatpush1.bf16.msra.mxu0 %v2837_v22 }
0x176d   :  { %2388 = vmatprep.subr.bf16.mxu0 %v2840_v23 }
0x1770   :  { %2390 = vmatpush1.bf16.msra.mxu0 %v2862_v29 }
0x1771   :  { %2392 = vmatprep.subr.bf16.mxu0 %v2865_v30 }
0x1774   :  { %2394 = vmatpush1.bf16.msra.mxu0 %v2881_v34 }
0x1775   :  { %2396 = vmatprep.subr.bf16.mxu0 %v2800_v11 }
0x183a   :  { %v1464_v31 = vpop.f32.mrb[8].mxu0 }
0x183b   :  { %v1469_v32 = vadd.f32 %v1464_v31, %v267_v27  ;;  %v1466_v33 = vpop.f32.mrb[9].mxu0 }
0x183c   :  { %v1470_v35 = vadd.f32 %v1466_v33, %v269_v28 }
0x183e   :  { %2607 = vtanh.f32 %v1470_v35 }
0x183f   :  { %2609 = vtanh.f32 %v1469_v32 }
0x1848   :  { %v2608_v36 = vpop.eup %2607 }
0x1849   :  { %1479 = vrot.lane.b32.xlu0 %v2608_v36, %s2723_s11  ;;  %v2610_v37 = vpop.eup %2609  ;;  %v1474_v48 = vmul.f32 0.5, %v2608_v36 }
0x184a   :  { %v1473_v38 = vmul.f32 0.5, %v2610_v37 }
0x184b   :  { %v1476_v42 = vadd.f32 0.5, %v1474_v48 }
0x184c   :  { %v1475_v39 = vadd.f32 0.5, %v1473_v38 }
0x184e   :  { %v1477_v55 = vmul.f32 %v1475_v39, %v1383_v21 }
0x18bb   :  { %v1480_v47 = vpop.permute.xlu0 %1479 }
0x18bc   :  { %v1482_v40 = vmul.f32 %v1480_v47, %v1475_v39 }
0x18be   :  { %1484 = vrot.lane.b32.xlu1 %v1482_v40, %s2723_s11 }
0x1930   :  { %v1485_v41 = vpop.permute.xlu1 %1484 }
0x1931   :  { %v1487_v51 = vadd.f32 %v1485_v41, %v1477_v55  ;;  %v285_v41 = vadd.f32 %v2988_v62, %v3007_v17 }
0x1933   :  { %2611 = vtanh.f32 %v1487_v51 }
0x193d   :  { %v2612_v56 = vpop.eup %2611 }
0x193e   :  { %1490 = vrot.lane.b32.xlu0 %v2612_v56, %s2723_s11 }
0x19b0   :  { %v1491_v52 = vpop.permute.xlu0 %1490 }
0x19b1   :  { %v1493_v43 = vmul.f32 %v1491_v52, %v1476_v42 }
0x19b3   :  { %2162 = vmatmul.mubr.msk.f32.vlgmr.msra.gmra.mrb[10].mxu0 %vm354_vm4, %v1493_v43 }
0x19b4   :  { %2398 = vmatpush1.bf16.msra.mxu0 %v2805_v13  ;;  %1670 = vmatprep.mubr.f32.mxu0 %v2721_v0 }
0x19b5   :  { %2400 = vmatprep.subr.bf16.mxu0 %v2814_v16 }
0x19b8   :  { %2402 = vmatpush1.bf16.msra.mxu0 %v2837_v22 }
0x19b9   :  { %2404 = vmatprep.subr.bf16.mxu0 %v2840_v23 }
0x19bc   :  { %2406 = vmatpush1.bf16.msra.mxu0 %v2862_v29 }
0x19bd   :  { %2408 = vmatprep.subr.bf16.mxu0 %v2865_v30 }
0x19c0   :  { %2410 = vmatpush1.bf16.msra.mxu0 %v2881_v34 }
0x19c1   :  { %2412 = vmatprep.subr.bf16.mxu0 %v2800_v11 }
0x1a86   :  { %v1568_v46 = vpop.f32.mrb[10].mxu0 }
0x1a87   :  { %v1573_v61 = vadd.f32 %v1568_v46, %v273_v44  ;;  %v1570_v1 = vpop.f32.mrb[11].mxu0 }
0x1a88   :  { %v1574_v4 = vadd.f32 %v1570_v1, %v275_v45 }
0x1a8a   :  { %2613 = vtanh.f32 %v1574_v4 }
0x1a8b   :  { %2615 = vtanh.f32 %v1573_v61 }
0x1a94   :  { %v2614_v6 = vpop.eup %2613 }
0x1a95   :  { %1583 = vrot.lane.b32.xlu1 %v2614_v6, %s2723_s11  ;;  %v2616_v9 = vpop.eup %2615  ;;  %v1578_v49 = vmul.f32 0.5, %v2614_v6 }
0x1a96   :  { %v1577_v10 = vmul.f32 0.5, %v2616_v9 }
0x1a97   :  { %v1580_v53 = vadd.f32 0.5, %v1578_v49 }
0x1a98   :  { %v1579_v12 = vadd.f32 0.5, %v1577_v10 }
0x1a9a   :  { %v1581_v57 = vmul.f32 %v1579_v12, %v1487_v51  ;;  %v287_v51 = vadd.f32 %v2990_v63, %v3003_v8 }
0x1b07   :  { %v1584_v14 = vpop.permute.xlu1 %1583 }
0x1b08   :  { %v1586_v15 = vmul.f32 %v1584_v14, %v1579_v12  ;;  %v291_v14 = vadd.f32 %v2992_v2, %v3007_v17 }
0x1b0a   :  { %1588 = vrot.lane.b32.xlu0 %v1586_v15, %s2723_s11 }
0x1b7c   :  { %v1589_v18 = vpop.permute.xlu0 %1588 }
0x1b7d   :  { %v1591_v19 = vadd.f32 %v1589_v18, %v1581_v57 }
0x1b7f   :  { %2617 = vtanh.f32 %v1591_v19 }
0x1b89   :  { %v2618_v58 = vpop.eup %2617 }
0x1b8a   :  { %1594 = vrot.lane.b32.xlu1 %v2618_v58, %s2723_s11 }
0x1bfc   :  { %v1595_v20 = vpop.permute.xlu1 %1594 }
0x1bfd   :  { %v1597_v21 = vmul.f32 %v1595_v20, %v1580_v53 }
0x1bff   :  { %2163 = vmatmul.mubr.msk.f32.vlgmr.msra.gmra.mrb[12].mxu0 %vm354_vm4, %v1597_v21 }
0x1c00   :  { %2414 = vmatpush1.bf16.msra.mxu0 %v2805_v13  ;;  %1774 = vmatprep.mubr.f32.mxu0 %v2721_v0 }
0x1c01   :  { %2416 = vmatprep.subr.bf16.mxu0 %v2814_v16 }
0x1c04   :  { %2418 = vmatpush1.bf16.msra.mxu0 %v2837_v22 }
0x1c05   :  { %2420 = vmatprep.subr.bf16.mxu0 %v2840_v23 }
0x1c08   :  { %2422 = vmatpush1.bf16.msra.mxu0 %v2862_v29 }
0x1c09   :  { %2424 = vmatprep.subr.bf16.mxu0 %v2865_v30 }
0x1c0c   :  { %2426 = vmatpush1.bf16.msra.mxu0 %v2881_v34 }
0x1c0d   :  { %2428 = vmatprep.subr.bf16.mxu0 %v2800_v11 }
0x1cd2   :  { %v1672_v24 = vpop.f32.mrb[12].mxu0 }
0x1cd3   :  { %v1677_v25 = vadd.f32 %v1672_v24, %v279_v54  ;;  %v1674_v26 = vpop.f32.mrb[13].mxu0  ;;  %v299_v24 = vadd.f32 %v3001_v7, %v3003_v8  ;;  %v2724_v7 = vmov 0.0|0.0  }
0x1cd4   :  { %v1678_v27 = vadd.f32 %v1674_v26, %v281_v50  ;;  %v297_v50 = vadd.f32 %v2996_v5, %v3007_v17  ;;  %v2014_v5 = vld [vmem:[#allocation6] sm:$0xff]  ;;  %v2015_v17 = vld [vmem:[#allocation6 + $0x8] sm:$0xff]  ;;  %2459 = vmatprep.subr.bf16.mxu1 %v2724_v7 }
0x1cd6   :  { %2619 = vtanh.f32 %v1678_v27 }
0x1cd7   :  { %2621 = vtanh.f32 %v1677_v25 }
0x1ce0   :  { %v2620_v28 = vpop.eup %2619 }
0x1ce1   :  { %1687 = vrot.lane.b32.xlu0 %v2620_v28, %s2723_s11  ;;  %v2622_v31 = vpop.eup %2621  ;;  %v1682_v39 = vmul.f32 0.5, %v2620_v28 }
0x1ce2   :  { %v1681_v32 = vmul.f32 0.5, %v2622_v31 }
0x1ce3   :  { %v1684_v47 = vadd.f32 0.5, %v1682_v39  ;;  %v2018_v39 = vld [vmem:[#allocation6 + $0x20] sm:$0xff] }
0x1ce4   :  { %v1683_v33 = vadd.f32 0.5, %v1681_v32 }
0x1ce6   :  { %v1685_v59 = vmul.f32 %v1683_v33, %v1591_v19 }
0x1d53   :  { %v1688_v35 = vpop.permute.xlu0 %1687 }
0x1d54   :  { %v1690_v36 = vmul.f32 %v1688_v35, %v1683_v33 }
0x1d56   :  { %1692 = vrot.lane.b32.xlu1 %v1690_v36, %s2723_s11 }
0x1dc8   :  { %v1693_v37 = vpop.permute.xlu1 %1692 }
0x1dc9   :  { %v1695_v38 = vadd.f32 %v1693_v37, %v1685_v59  ;;  %v2016_v37 = vld [vmem:[#allocation6 + $0x10] sm:$0xff] }
0x1dcb   :  { %2623 = vtanh.f32 %v1695_v38 }
0x1dd5   :  { %v2624_v60 = vpop.eup %2623 }
0x1dd6   :  { %1698 = vrot.lane.b32.xlu0 %v2624_v60, %s2723_s11 }
0x1e48   :  { %v1699_v40 = vpop.permute.xlu0 %1698 }
0x1e49   :  { %v1701_v55 = vmul.f32 %v1699_v40, %v1684_v47  ;;  %v2019_v47 = vld [vmem:[#allocation6 + $0x28] sm:$0xff] }
0x1e4a   :  { %v2466_v40 = vpack.c.bf16 %v2019_v47, %v2018_v39 }
0x1e4b   :  { %2164 = vmatmul.mubr.msk.f32.vlgmr.msra.gmra.mrb[14].mxu0 %vm354_vm4, %v1701_v55  ;;  %v2020_v55 = vld [vmem:[#allocation6 + $0x30] sm:$0xff] }
0x1e4c   :  { %2430 = vmatpush1.bf16.msra.mxu0 %v2805_v13  ;;  %1878 = vmatprep.mubr.f32.mxu0 %v2721_v0 }
0x1e4d   :  { %2432 = vmatprep.subr.bf16.mxu0 %v2814_v16 }
0x1e50   :  { %2434 = vmatpush1.bf16.msra.mxu0 %v2837_v22 }
0x1e51   :  { %2436 = vmatprep.subr.bf16.mxu0 %v2840_v23 }
0x1e54   :  { %2438 = vmatpush1.bf16.msra.mxu0 %v2862_v29 }
0x1e55   :  { %2440 = vmatprep.subr.bf16.mxu0 %v2865_v30 }
0x1e58   :  { %2442 = vmatpush1.bf16.msra.mxu0 %v2881_v34 }
0x1e59   :  { %2444 = vmatprep.subr.bf16.mxu0 %v2800_v11 }
0x1f1e   :  { %v1776_v56 = vpop.f32.mrb[14].mxu0 }
0x1f1f   :  { %v1781_v48 = vadd.f32 %v1776_v56, %v285_v41  ;;  %v1778_v42 = vpop.f32.mrb[15].mxu0  ;;  %v2021_v41 = vld [vmem:[#allocation6 + $0x38] sm:$0xff] }
0x1f20   :  { %v1782_v52 = vadd.f32 %v1778_v42, %v287_v51  ;;  %v2469_v51 = vpack.c.bf16 %v2021_v41, %v2020_v55 }
0x1f22   :  { %2625 = vtanh.f32 %v1782_v52 }
0x1f23   :  { %2627 = vtanh.f32 %v1781_v48 }
0x1f2c   :  { %v2626_v43 = vpop.eup %2625 }
0x1f2d   :  { %1791 = vrot.lane.b32.xlu1 %v2626_v43, %s2723_s11  ;;  %v2628_v44 = vpop.eup %2627  ;;  %v1786_v6 = vmul.f32 0.5, %v2626_v43 }
0x1f2e   :  { %v1785_v45 = vmul.f32 0.5, %v2628_v44 }
0x1f2f   :  { %v1788_v9 = vadd.f32 0.5, %v1786_v6 }
0x1f30   :  { %v1787_v46 = vadd.f32 0.5, %v1785_v45 }
0x1f32   :  { %v1789_v62 = vmul.f32 %v1787_v46, %v1695_v38  ;;  %v2017_v38 = vld [vmem:[#allocation6 + $0x18] sm:$0xff] }
0x1f33   :  { %v2463_v60 = vpack.c.bf16 %v2017_v38, %v2016_v37 }
0x1f9f   :  { %v1792_v61 = vpop.permute.xlu1 %1791 }
0x1fa0   :  { %v1794_v11 = vmul.f32 %v1792_v61, %v1787_v46  ;;  %v2167_v61 = vld [vmem:[%s3259_s5] ss:$0 sm:$0xff] }
0x1fa2   :  { %1796 = vrot.lane.b32.xlu0 %v1794_v11, %s2723_s11 }
0x2014   :  { %v1797_v1 = vpop.permute.xlu0 %1796 }
0x2015   :  { %v1799_v4 = vadd.f32 %v1797_v1, %v1789_v62 }
0x2017   :  { %2629 = vtanh.f32 %v1799_v4 }
0x2021   :  { %v2630_v63 = vpop.eup %2629 }
0x2022   :  { %1802 = vrot.lane.b32.xlu1 %v2630_v63, %s2723_s11 }
0x2094   :  { %v1803_v10 = vpop.permute.xlu1 %1802 }
0x2095   :  { %v1805_v12 = vmul.f32 %v1803_v10, %v1788_v9 }
0x2097   :  { %2165 = vmatmul.mubr.msk.f32.vlgmr.msra.gmra.mrb[16].mxu0 %vm354_vm4, %v1805_v12 }
0x2098   :  { %2446 = vmatpush1.bf16.msra.mxu0 %v2805_v13  ;;  %1982 = vmatprep.mubr.f32.mxu0 %v2721_v0  ;;  %v293_v13 = vadd.f32 %v2994_v3, %v3003_v8  ;;  %v2460_v8 = vpack.c.bf16 %v2015_v17, %v2014_v5 }
0x2099   :  { %2448 = vmatprep.subr.bf16.mxu0 %v2814_v16 }
0x209a   :  { %2461 = vmatpush3.bf16.msra.mxu1 %v2460_v8 }
0x209b   :  { %2462 = vmatprep.subr.bf16.mxu1 %v2724_v7 }
0x209c   :  { %2450 = vmatpush1.bf16.msra.mxu0 %v2837_v22 }
0x209d   :  { %2452 = vmatprep.subr.bf16.mxu0 %v2840_v23 }
0x209e   :  { %2464 = vmatpush3.bf16.msra.mxu1 %v2463_v60 }
0x209f   :  { %2465 = vmatprep.subr.bf16.mxu1 %v2724_v7 }
0x20a0   :  { %2454 = vmatpush1.bf16.msra.mxu0 %v2862_v29 }
0x20a1   :  { %2456 = vmatprep.subr.bf16.mxu0 %v2865_v30 }
0x20a2   :  { %2467 = vmatpush3.bf16.msra.mxu1 %v2466_v40 }
0x20a3   :  { %2468 = vmatprep.subr.bf16.mxu1 %v2724_v7 }
0x20a4   :  { %2458 = vmatpush1.bf16.msra.mxu0 %v2881_v34 }
0x20a6   :  { %2470 = vmatpush3.bf16.msra.mxu1 %v2469_v51 }
0x216a   :  { %v1880_v15 = vpop.f32.mrb[16].mxu0 }
0x216b   :  { %v1885_v57 = vadd.f32 %v1880_v15, %v291_v14  ;;  %v1882_v18 = vpop.f32.mrb[17].mxu0 }
0x216c   :  { %v1886_v16 = vadd.f32 %v1882_v18, %v293_v13 }
0x216e   :  { %2631 = vtanh.f32 %v1886_v16 }
0x216f   :  { %2633 = vtanh.f32 %v1885_v57 }
0x2178   :  { %v2632_v22 = vpop.eup %2631 }
0x2179   :  { %1895 = vrot.lane.b32.xlu0 %v2632_v22, %s2723_s11  ;;  %v2634_v23 = vpop.eup %2633  ;;  %v1890_v53 = vmul.f32 0.5, %v2632_v22 }
0x217a   :  { %v1889_v29 = vmul.f32 0.5, %v2634_v23 }
0x217b   :  { %v1892_v20 = vadd.f32 0.5, %v1890_v53 }
0x217c   :  { %v1891_v30 = vadd.f32 0.5, %v1889_v29 }
0x217e   :  { %v1893_v2 = vmul.f32 %v1891_v30, %v1799_v4 }
0x21eb   :  { %v1896_v19 = vpop.permute.xlu0 %1895 }
0x21ec   :  { %v1898_v34 = vmul.f32 %v1896_v19, %v1891_v30 }
0x21ee   :  { %1900 = vrot.lane.b32.xlu1 %v1898_v34, %s2723_s11 }
0x2260   :  { %v1901_v58 = vpop.permute.xlu1 %1900 }
0x2261   :  { %v1903_v49 = vadd.f32 %v1901_v58, %v1893_v2 }
0x2263   :  { %2635 = vtanh.f32 %v1903_v49 }
0x226d   :  { %v2636_v3 = vpop.eup %2635 }
0x226e   :  { %1906 = vrot.lane.b32.xlu0 %v2636_v3, %s2723_s11 }
0x22e0   :  { %v1907_v21 = vpop.permute.xlu0 %1906 }
0x22e1   :  { %v1909_v54 = vmul.f32 %v1907_v21, %v1892_v20 }
0x22e3   :  { %2166 = vmatmul.mubr.msk.f32.vlgmr.msra.gmra.mrb[18].mxu0 %vm354_vm4, %v1909_v54 }
0x23b6   :  { %v1984_v25 = vpop.f32.mrb[18].mxu0 }
0x23b7   :  { %v1989_v26 = vadd.f32 %v1984_v25, %v297_v50  ;;  %v1986_v27 = vpop.f32.mrb[19].mxu0 }
0x23b8   :  { %v1990_v28 = vadd.f32 %v1986_v27, %v299_v24 }
0x23ba   :  { %2637 = vtanh.f32 %v1990_v28 }
0x23bb   :  { %2639 = vtanh.f32 %v1989_v26 }
0x23c4   :  { %v2638_v31 = vpop.eup %2637 }
0x23c5   :  { %1999 = vrot.lane.b32.xlu1 %v2638_v31, %s2723_s11  ;;  %v2640_v32 = vpop.eup %2639  ;;  %v1994_v43 = vmul.f32 0.5, %v2638_v31 }
0x23c6   :  { %v1993_v33 = vmul.f32 0.5, %v2640_v32 }
0x23c7   :  { %v1996_v44 = vadd.f32 0.5, %v1994_v43 }
0x23c8   :  { %v1995_v35 = vadd.f32 0.5, %v1993_v33 }
0x23ca   :  { %v1997_v56 = vmul.f32 %v1995_v35, %v1903_v49 }
0x2437   :  { %v2000_v36 = vpop.permute.xlu1 %1999 }
0x2438   :  { %v2002_v59 = vmul.f32 %v2000_v36, %v1995_v35 }
0x243a   :  { %2004 = vrot.lane.b32.xlu0 %v2002_v59, %s2723_s11 }
0x24ac   :  { %v2005_v48 = vpop.permute.xlu0 %2004 }
0x24ad   :  { %v2007_v42 = vadd.f32 %v2005_v48, %v1997_v56 }
0x24af   :  { %2641 = vtanh.f32 %v2007_v42 }
0x24b9   :  { %v2642_v52 = vpop.eup %2641 }
0x24ba   :  { %2010 = vrot.lane.b32.xlu1 %v2642_v52, %s2723_s11 }
0x252c   :  { %v2011_v45 = vpop.permute.xlu1 %2010 }
0x252d   :  { %v2013_v46 = vmul.f32 %v2011_v45, %v1996_v44 }
0x252f   :  { %2195 = vmatmul.mubr.msk.f32.vlgmr.msra.gmra.mrb[32].mxu1 %vm354_vm4, %v2013_v46 }
0x2602   :  { %v2098_v11 = vpop.f32.mrb[32].mxu1 }
0x2603   :  { %v2099_v62 = vadd.f32 %v2167_v61, %v2098_v11  ;;  %v2196_v1 = vpop.f32.mrb[33].mxu1 }
0x2605   :  { %2102 = vst [vmem:[#allocation8] sm:$0xff] %v2099_v62 }
0x2606   :  { %2698 = shalt.err (!%p2695_p6)
}
0x2607   :  { %s2699_s17 = scalar_lea.hbm %s3260_s6, 128 }
0x2608   :  { %p2700_p7 = scmp.ne.s32.totalorder %s3260_s6, %s2699_s17  ;;  %p2703_p8 = scmp.lt.u32.totalorder %s2699_s17, %s3260_s6 }
0x260a   :  { %p2705_p9 = pnand %p2703_p8, %p2700_p7 }
0x260c   :  { %2708 = shalt.err (!%p2705_p9)
}
0x260d   :  { %2112 = dma.vmem_to_hbm [thread:$0]  %s2110_s13, 128, %s3260_s6, [#allocation5]  }
0x260e   :  { %2713 = dma.done.wait [#allocation5], 128  }
0x260f   :  { %2714 = vsyncadd [#allocation5], 4294967168 }
0x2610   :  { %2116 = vsyncpa [#allocation4], 1 }
0x2611   :  { %2117 = vsyncpa [#allocation7], 1 }
0x2612   :  { %2118 = vsyncpa [#allocation5], 1 }

</bundles_post_ra>
